<compile_context>
chip_gen: v7x
topology: tpu7x:2x2x1
jax: 0.10.0
libtpu: 0.0.40
codegen_flags: <defaults>
</compile_context>

<pallas_src>
import jax
import jax.numpy as jnp
from jax import lax
from jax.experimental import pallas as pl
from jax.experimental.pallas import tpu as pltpu

DIM = (256, 64)
LAMBDA = (1.0, 0.001, 1.0, 0.25)
EPS = 1e-5                       # BatchNorm1d default eps
IN_X, IN_A = 310, 31             # feature sizes from the module definition
IN_X_PAD, IN_A_PAD = 384, 128    # lane-dense padded feature sizes
PACK_W = IN_X_PAD + IN_A_PAD     # 512 = packed [x | a] / [x_ | a_] lane width
N = 8                            # batch size (BatchNorm training mode needs N > 1)

# rows of the packed f32 parameter block (shape (_PB_ROWS, PACK_W))
_R_B11 = 0          # rows 0..6 : biases of l11..l17          (256 lanes each)
_R_B21 = 7          # bias of l21                             (256)
_R_G1 = 8           # bn1 gamma                               (256)
_R_BE1 = 9          # bn1 beta                                (256)
_R_BF = 10          # [b18 | b22]                             (128)
_R_G2T = 11         # [g2 | g2]   (bn2 gamma tiled)           (128)
_R_BE2T = 12        # [be2 | be2] (bn2 beta tiled)            (128)
_R_BREC = 13        # [b19 padded to 384 | b23 padded to 128] (512)
_PB_ROWS = 16


# ----------------------------- kernel helpers -----------------------------

def _bn_train(h, gamma, beta):
    # PyTorch BatchNorm1d forward in training mode: biased batch statistics.
    # (h - mean) computed once and reused for the variance.
    mean = jnp.mean(h, axis=0, keepdims=True)
    cen = h - mean
    var = jnp.mean(cen * cen, axis=0, keepdims=True)
    return cen * lax.rsqrt(var + EPS) * gamma + beta


# --------------------------------- kernel ----------------------------------

def embedding_net_kernel(xa_ref, w11_ref, w1mid_ref, w18_ref, w21_ref,
                         w22_ref, wrec_ref, pb_ref,
                         f_o, rec_o, loss_o):
    xa = xa_ref[...]                                    # (N, 512) f32: [x | a]
    n = xa.shape[0]
    x_b = xa[:, 0:IN_X_PAD].astype(jnp.bfloat16)        # (N, 384) tile-aligned slice
    a_b = xa[:, IN_X_PAD:PACK_W].astype(jnp.bfloat16)   # (N, 128) tile-aligned slice

    # NOTE: bias/BN rows are (1, d) slices of the packed block; a
    # pl.ds(row, N, stride=0) sublane-broadcast load would shave a little
    # more XLU work but the plain slice is kept for lowering safety.

    # ---- transform(), branch 1: l11..l17 chained in-kernel ----
    z = (jnp.dot(x_b, w11_ref[...], preferred_element_type=jnp.float32)
         + pb_ref[_R_B11:_R_B11 + 1, 0:DIM[0]])
    for i in range(6):                                  # l12..l17, unrolled
        r = _R_B11 + 1 + i
        z = (jnp.dot(z.astype(jnp.bfloat16), w1mid_ref[i],
                     preferred_element_type=jnp.float32)
             + pb_ref[r:r + 1, 0:DIM[0]])

    # ---- transform(), branch 2: l21 -> BN1(train) -> ReLU ----
    h = (jnp.dot(a_b, w21_ref[...], preferred_element_type=jnp.float32)
         + pb_ref[_R_B21:_R_B21 + 1, 0:DIM[0]])
    h = jnp.maximum(_bn_train(h,
                              pb_ref[_R_G1:_R_G1 + 1, 0:DIM[0]],
                              pb_ref[_R_BE1:_R_BE1 + 1, 0:DIM[0]]), 0.0)

    # ---- packed embedding f = [z1 | z2] via zero-column-padded l18 / l22 ----
    f = (jnp.dot(z.astype(jnp.bfloat16), w18_ref[...],
                 preferred_element_type=jnp.float32)
         + jnp.dot(h.astype(jnp.bfloat16), w22_ref[...],
                   preferred_element_type=jnp.float32)
         + pb_ref[_R_BF:_R_BF + 1, 0:2 * DIM[1]])       # (N, 128)

    # ---- reconstruction(): single (N,128)@(128,512) matmul ----
    rec = (jnp.dot(f.astype(jnp.bfloat16), wrec_ref[...],
                   preferred_element_type=jnp.float32)
           + pb_ref[_R_BREC:_R_BREC + 1, :])            # (N, 512) = [x_ | a_pre]
    lane = lax.broadcasted_iota(jnp.int32, rec.shape, 1)
    a_zone = lane >= IN_X_PAD
    # sigmoid + zero the padded lanes of the a-part (matches zero-padded `a`);
    # x-part stays raw (no activation on l19).
    rec = jnp.where(a_zone,
                    jnp.where(lane < IN_X_PAD + IN_A, jax.nn.sigmoid(rec), 0.0),
                    rec)

    # ---- compute_loss(): reconstruction MSEs (padded lanes are 0 on both sides) ----
    d2 = (xa - rec) ** 2
    r1 = LAMBDA[0] * jnp.sum(jnp.where(a_zone, d2, 0.0), keepdims=True) / (n * IN_A)
    r2 = LAMBDA[1] * jnp.sum(jnp.where(a_zone, 0.0, d2), keepdims=True) / (n * IN_X)

    # ---- compability_loss(): ONE fused bn2 over the packed embedding, then
    #      cross-correlation contracting the batch axis (no transpose). The
    #      [0:64, 64:128] block of c is bn2(z1).T @ bn2(z2); select it by mask.
    fn = _bn_train(f,
                   pb_ref[_R_G2T:_R_G2T + 1, 0:2 * DIM[1]],
                   pb_ref[_R_BE2T:_R_BE2T + 1, 0:2 * DIM[1]])
    c = lax.dot_general(fn, fn, dimension_numbers=(((0,), (0,)), ((), ())),
                        preferred_element_type=jnp.float32) / n     # (128, 128)
    row = lax.broadcasted_iota(jnp.int32, c.shape, 0)
    col = lax.broadcasted_iota(jnp.int32, c.shape, 1)
    in_blk = (row < DIM[1]) & (col >= DIM[1])
    is_diag = in_blk & (col == row + DIM[1])
    on_diag = jnp.sum(jnp.where(is_diag, (c - 1.0) ** 2, 0.0), keepdims=True)
    off_diag = jnp.sum(jnp.where(in_blk, jnp.where(is_diag, 0.0, c * c), 0.0),
                       keepdims=True)
    cm = LAMBDA[2] * (on_diag + LAMBDA[3] * off_diag)
    total = r1 + r2 + cm

    # ---- lane-dense stores ----
    f_o[...] = f                    # (N, 128) packed [z1 | z2]
    rec_o[...] = rec                # (N, 512) packed [x_ | a_]
    lane4 = lax.broadcasted_iota(jnp.int32, (1, 2 * DIM[1]), 1)
    loss_o[...] = (jnp.where(lane4 == 0, r1, 0.0)
                   + jnp.where(lane4 == 1, r2, 0.0)
                   + jnp.where(lane4 == 2, cm, 0.0)
                   + jnp.where(lane4 == 3, total, 0.0))


# ------------------------------ params / glue -------------------------------

PARAM_ORDER = [
    ("l11", IN_X, DIM[0]), ("l12", DIM[0], DIM[0]), ("l13", DIM[0], DIM[0]),
    ("l14", DIM[0], DIM[0]), ("l15", DIM[0], DIM[0]), ("l16", DIM[0], DIM[0]),
    ("l17", DIM[0], DIM[0]), ("l18", DIM[0], DIM[1]), ("l19", 2 * DIM[1], IN_X),
    ("l21", IN_A, DIM[0]), ("l22", DIM[0], DIM[1]), ("l23", 2 * DIM[1], IN_A),
]


def init_params(key):
    """Deterministic init mimicking nn.Linear's U(-1/sqrt(fan_in), 1/sqrt(fan_in))."""
    params = {}
    for name, fan_in, fan_out in PARAM_ORDER:
        key, kw, kb = jax.random.split(key, 3)
        bound = 1.0 / (fan_in ** 0.5)
        w = jax.random.uniform(kw, (fan_in, fan_out), jnp.float32, -bound, bound)
        b = jax.random.uniform(kb, (1, fan_out), jnp.float32, -bound, bound)
        params[name] = (w, b)
    params["bn1"] = (jnp.ones((1, DIM[0]), jnp.float32),
                     jnp.zeros((1, DIM[0]), jnp.float32))
    params["bn2"] = (jnp.ones((1, DIM[1]), jnp.float32),
                     jnp.zeros((1, DIM[1]), jnp.float32))
    return params


def _pad2(arr, rows, cols):
    return jnp.pad(arr, ((0, rows - arr.shape[0]), (0, cols - arr.shape[1])))


def embedding_net_forward(x, a, params):
    nb = x.shape[0]

    # --- packed, lane-dense input [x | a] (zero padded) ---
    xa = jnp.zeros((nb, PACK_W), jnp.float32)
    xa = xa.at[:, :IN_X].set(x).at[:, IN_X_PAD:IN_X_PAD + IN_A].set(a)

    # --- weights: pre-transposed (in, out), padded, bf16 for the MXU ---
    w11_p = _pad2(params["l11"][0], IN_X_PAD, DIM[0]).astype(jnp.bfloat16)
    w1mid = jnp.stack([params[k][0] for k in
                       ("l12", "l13", "l14", "l15", "l16", "l17")],
                      axis=0).astype(jnp.bfloat16)                  # (6, 256, 256)
    w18_p = (jnp.zeros((DIM[0], 2 * DIM[1]), jnp.float32)
             .at[:, :DIM[1]].set(params["l18"][0])).astype(jnp.bfloat16)
    w21_p = _pad2(params["l21"][0], IN_A_PAD, DIM[0]).astype(jnp.bfloat16)
    w22_p = (jnp.zeros((DIM[0], 2 * DIM[1]), jnp.float32)
             .at[:, DIM[1]:].set(params["l22"][0])).astype(jnp.bfloat16)

    # merged reconstruction weight: [x_ | a_pre] = [z1 | z2] @ w_rec + b_rec
    w19 = params["l19"][0]                       # (128, 310): rows 0:64 <- z1, 64:128 <- z2
    w23 = params["l23"][0]                       # (128, 31):  rows 0:64 <- z2, 64:128 <- z1
    w_rec = jnp.zeros((2 * DIM[1], PACK_W), jnp.float32)
    w_rec = w_rec.at[:, :IN_X].set(w19)
    w_rec = w_rec.at[0:DIM[1], IN_X_PAD:IN_X_PAD + IN_A].set(w23[DIM[1]:, :])
    w_rec = w_rec.at[DIM[1]:, IN_X_PAD:IN_X_PAD + IN_A].set(w23[0:DIM[1], :])
    w_rec = w_rec.astype(jnp.bfloat16)

    # --- pack all tiny bias / BN vectors into one f32 block ---
    pb = jnp.zeros((_PB_ROWS, PACK_W), jnp.float32)

    def set_row(blk, r, v, off=0):
        return blk.at[r, off:off + v.shape[1]].set(v[0])

    pb = set_row(pb, _R_B11, params["l11"][1])
    for i, name in enumerate(("l12", "l13", "l14", "l15", "l16", "l17")):
        pb = set_row(pb, _R_B11 + 1 + i, params[name][1])
    pb = set_row(pb, _R_B21, params["l21"][1])
    pb = set_row(pb, _R_G1, params["bn1"][0])
    pb = set_row(pb, _R_BE1, params["bn1"][1])
    pb = set_row(pb, _R_BF, params["l18"][1], 0)
    pb = set_row(pb, _R_BF, params["l22"][1], DIM[1])
    pb = set_row(pb, _R_G2T, params["bn2"][0], 0)
    pb = set_row(pb, _R_G2T, params["bn2"][0], DIM[1])
    pb = set_row(pb, _R_BE2T, params["bn2"][1], 0)
    pb = set_row(pb, _R_BE2T, params["bn2"][1], DIM[1])
    pb = set_row(pb, _R_BREC, params["l19"][1], 0)
    pb = set_row(pb, _R_BREC, params["l23"][1], IN_X_PAD)

    vmem = pl.BlockSpec(memory_space=pltpu.MemorySpace.VMEM)
    # NOTE: single grid point -> one TensorCore. For training loops with many
    # independent micro-batches, add a leading "parallel" grid axis over them
    # to use both v7x TensorCores.
    f, rec, losses = pl.pallas_call(
        embedding_net_kernel,
        out_shape=(
            jax.ShapeDtypeStruct((nb, 2 * DIM[1]), jnp.float32),  # [z1 | z2]
            jax.ShapeDtypeStruct((nb, PACK_W), jnp.float32),      # [x_ | a_] (padded)
            jax.ShapeDtypeStruct((1, 2 * DIM[1]), jnp.float32),   # [r1, r2, cm, loss, 0...]
        ),
        in_specs=[vmem] * 8,
        out_specs=(vmem, vmem, vmem),
    )(xa, w11_p, w1mid, w18_p, w21_p, w22_p, w_rec, pb)

    return {"z1": f[:, :DIM[1]], "z2": f[:, DIM[1]:], "x": x,
            "x_": rec[:, :IN_X], "a_": rec[:, IN_X_PAD:IN_X_PAD + IN_A],
            "r1": losses[0, 0], "r2": losses[0, 1],
            "cm": losses[0, 2], "loss": losses[0, 3]}


# ---------------------------- pure-JAX reference ----------------------------

def reference_forward(x, a, params):
    def lin(h, name):
        w, b = params[name]
        return h @ w + b

    def bn(h, name):
        g, be = params[name]
        m = h.mean(0, keepdims=True)
        v = ((h - m) ** 2).mean(0, keepdims=True)
        return (h - m) / jnp.sqrt(v + EPS) * g + be

    z1 = x
    for name in ["l11", "l12", "l13", "l14", "l15", "l16", "l17", "l18"]:
        z1 = lin(z1, name)
    z2 = jnp.maximum(bn(lin(a, "l21"), "bn1"), 0.0)
    z2 = lin(z2, "l22")
    x_rec = lin(jnp.concatenate([z1, z2], 1), "l19")
    a_rec = jax.nn.sigmoid(lin(jnp.concatenate([z2, z1], 1), "l23"))
    r1 = LAMBDA[0] * jnp.mean((a - a_rec) ** 2)
    r2 = LAMBDA[1] * jnp.mean((x - x_rec) ** 2)
    c = bn(z1, "bn2").T @ bn(z2, "bn2") / x.shape[0]
    on = jnp.sum((jnp.diag(c) - 1.0) ** 2)
    off = jnp.sum(c ** 2) - jnp.sum(jnp.diag(c) ** 2)
    cm = LAMBDA[2] * (on + LAMBDA[3] * off)
    return z1, z2, x_rec, a_rec, r1, r2, cm, r1 + r2 + cm


# ----------------------------------- main -----------------------------------

if __name__ == "__main__":
    key = jax.random.PRNGKey(0)
    kx, ka, kp = jax.random.split(key, 3)
    x = jax.random.normal(kx, (N, IN_X), jnp.float32)
    a = jax.random.uniform(ka, (N, IN_A), jnp.float32)
    params = init_params(kp)

    out = jax.jit(embedding_net_forward)(x, a, params)
    jax.block_until_ready(out)

    ref = reference_forward(x, a, params)
    got = [out["z1"], out["z2"], out["x_"], out["a_"],
           out["r1"], out["r2"], out["cm"], out["loss"]]
    names = ["z1", "z2", "x_", "a_", "r1", "r2", "cm", "loss"]
    for nm, g, r in zip(names, got, ref):
        assert jnp.allclose(g, r, rtol=1e-2, atol=1e-2), f"mismatch in {nm}"

    print("KERNEL_OK")
</pallas_src>

<mosaic_0001>
module attributes {stable_mosaic.version = 11 : i64} {
  func.func @embedding_net_kernel(%arg0: memref<8x512xf32, #tpu.memory_space<vmem>>, %arg1: memref<384x256xbf16, #tpu.memory_space<vmem>>, %arg2: memref<6x256x256xbf16, #tpu.memory_space<vmem>>, %arg3: memref<256x128xbf16, #tpu.memory_space<vmem>>, %arg4: memref<128x256xbf16, #tpu.memory_space<vmem>>, %arg5: memref<256x128xbf16, #tpu.memory_space<vmem>>, %arg6: memref<128x512xbf16, #tpu.memory_space<vmem>>, %arg7: memref<16x512xf32, #tpu.memory_space<vmem>>, %arg8: memref<8x128xf32, #tpu.memory_space<vmem>>, %arg9: memref<8x512xf32, #tpu.memory_space<vmem>>, %arg10: memref<1x128xf32, #tpu.memory_space<vmem>>) attributes {dimension_semantics = [], scalar_prefetch = 0 : i64, scratch_operands = 0 : i64, tpu.core_type = #tpu.core_type<tc>} {
    %c0 = arith.constant 0 : index
    %c0_0 = arith.constant 0 : index
    %0 = vector.load %arg0[%c0, %c0_0] : memref<8x512xf32, #tpu.memory_space<vmem>>, vector<8x512xf32>
    %1 = vector.extract_strided_slice %0 {offsets = [0, 0], sizes = [8, 384], strides = [1, 1]} : vector<8x512xf32> to vector<8x384xf32>
    %2 = arith.truncf %1 : vector<8x384xf32> to vector<8x384xbf16>
    %3 = vector.extract_strided_slice %0 {offsets = [0, 384], sizes = [8, 128], strides = [1, 1]} : vector<8x512xf32> to vector<8x128xf32>
    %4 = arith.truncf %3 : vector<8x128xf32> to vector<8x128xbf16>
    %c0_1 = arith.constant 0 : index
    %c0_2 = arith.constant 0 : index
    %5 = vector.load %arg1[%c0_1, %c0_2] : memref<384x256xbf16, #tpu.memory_space<vmem>>, vector<384x256xbf16>
    %cst = arith.constant dense<0.000000e+00> : vector<8x256xf32>
    %6 = tpu.matmul %2, %5, %cst {dimension_numbers = #tpu.dot_dimension_numbers<[1], [0], [0], [1], [0, 0, 1, 1], [], []>} : vector<8x384xbf16>, vector<384x256xbf16>, vector<8x256xf32> -> vector<8x256xf32>
    %c0_3 = arith.constant 0 : index
    %c0_4 = arith.constant 0 : index
    %7 = vector.load %arg7[%c0_3, %c0_4] : memref<16x512xf32, #tpu.memory_space<vmem>>, vector<1x256xf32>
    %8 = vector.broadcast %7 : vector<1x256xf32> to vector<8x256xf32>
    %9 = arith.addf %6, %8 : vector<8x256xf32>
    %10 = arith.truncf %9 : vector<8x256xf32> to vector<8x256xbf16>
    %c0_5 = arith.constant 0 : index
    %c0_6 = arith.constant 0 : index
    %c0_7 = arith.constant 0 : index
    %11 = vector.load %arg2[%c0_5, %c0_6, %c0_7] : memref<6x256x256xbf16, #tpu.memory_space<vmem>>, vector<1x256x256xbf16>
    %12 = vector.shape_cast %11 : vector<1x256x256xbf16> to vector<256x256xbf16>
    %cst_8 = arith.constant dense<0.000000e+00> : vector<8x256xf32>
    %13 = tpu.matmul %10, %12, %cst_8 {dimension_numbers = #tpu.dot_dimension_numbers<[1], [0], [0], [1], [0, 0, 1, 1], [], []>} : vector<8x256xbf16>, vector<256x256xbf16>, vector<8x256xf32> -> vector<8x256xf32>
    %c1 = arith.constant 1 : index
    %c0_9 = arith.constant 0 : index
    %14 = vector.load %arg7[%c1, %c0_9] : memref<16x512xf32, #tpu.memory_space<vmem>>, vector<1x256xf32>
    %15 = vector.broadcast %14 : vector<1x256xf32> to vector<8x256xf32>
    %16 = arith.addf %13, %15 : vector<8x256xf32>
    %17 = arith.truncf %16 : vector<8x256xf32> to vector<8x256xbf16>
    %c1_10 = arith.constant 1 : index
    %c0_11 = arith.constant 0 : index
    %c0_12 = arith.constant 0 : index
    %18 = vector.load %arg2[%c1_10, %c0_11, %c0_12] : memref<6x256x256xbf16, #tpu.memory_space<vmem>>, vector<1x256x256xbf16>
    %19 = vector.shape_cast %18 : vector<1x256x256xbf16> to vector<256x256xbf16>
    %cst_13 = arith.constant dense<0.000000e+00> : vector<8x256xf32>
    %20 = tpu.matmul %17, %19, %cst_13 {dimension_numbers = #tpu.dot_dimension_numbers<[1], [0], [0], [1], [0, 0, 1, 1], [], []>} : vector<8x256xbf16>, vector<256x256xbf16>, vector<8x256xf32> -> vector<8x256xf32>
    %c2 = arith.constant 2 : index
    %c0_14 = arith.constant 0 : index
    %21 = vector.load %arg7[%c2, %c0_14] : memref<16x512xf32, #tpu.memory_space<vmem>>, vector<1x256xf32>
    %22 = vector.broadcast %21 : vector<1x256xf32> to vector<8x256xf32>
    %23 = arith.addf %20, %22 : vector<8x256xf32>
    %24 = arith.truncf %23 : vector<8x256xf32> to vector<8x256xbf16>
    %c2_15 = arith.constant 2 : index
    %c0_16 = arith.constant 0 : index
    %c0_17 = arith.constant 0 : index
    %25 = vector.load %arg2[%c2_15, %c0_16, %c0_17] : memref<6x256x256xbf16, #tpu.memory_space<vmem>>, vector<1x256x256xbf16>
    %26 = vector.shape_cast %25 : vector<1x256x256xbf16> to vector<256x256xbf16>
    %cst_18 = arith.constant dense<0.000000e+00> : vector<8x256xf32>
    %27 = tpu.matmul %24, %26, %cst_18 {dimension_numbers = #tpu.dot_dimension_numbers<[1], [0], [0], [1], [0, 0, 1, 1], [], []>} : vector<8x256xbf16>, vector<256x256xbf16>, vector<8x256xf32> -> vector<8x256xf32>
    %c3 = arith.constant 3 : index
    %c0_19 = arith.constant 0 : index
    %28 = vector.load %arg7[%c3, %c0_19] : memref<16x512xf32, #tpu.memory_space<vmem>>, vector<1x256xf32>
    %29 = vector.broadcast %28 : vector<1x256xf32> to vector<8x256xf32>
    %30 = arith.addf %27, %29 : vector<8x256xf32>
    %31 = arith.truncf %30 : vector<8x256xf32> to vector<8x256xbf16>
    %c3_20 = arith.constant 3 : index
    %c0_21 = arith.constant 0 : index
    %c0_22 = arith.constant 0 : index
    %32 = vector.load %arg2[%c3_20, %c0_21, %c0_22] : memref<6x256x256xbf16, #tpu.memory_space<vmem>>, vector<1x256x256xbf16>
    %33 = vector.shape_cast %32 : vector<1x256x256xbf16> to vector<256x256xbf16>
    %cst_23 = arith.constant dense<0.000000e+00> : vector<8x256xf32>
    %34 = tpu.matmul %31, %33, %cst_23 {dimension_numbers = #tpu.dot_dimension_numbers<[1], [0], [0], [1], [0, 0, 1, 1], [], []>} : vector<8x256xbf16>, vector<256x256xbf16>, vector<8x256xf32> -> vector<8x256xf32>
    %c4 = arith.constant 4 : index
    %c0_24 = arith.constant 0 : index
    %35 = vector.load %arg7[%c4, %c0_24] : memref<16x512xf32, #tpu.memory_space<vmem>>, vector<1x256xf32>
    %36 = vector.broadcast %35 : vector<1x256xf32> to vector<8x256xf32>
    %37 = arith.addf %34, %36 : vector<8x256xf32>
    %38 = arith.truncf %37 : vector<8x256xf32> to vector<8x256xbf16>
    %c4_25 = arith.constant 4 : index
    %c0_26 = arith.constant 0 : index
    %c0_27 = arith.constant 0 : index
    %39 = vector.load %arg2[%c4_25, %c0_26, %c0_27] : memref<6x256x256xbf16, #tpu.memory_space<vmem>>, vector<1x256x256xbf16>
    %40 = vector.shape_cast %39 : vector<1x256x256xbf16> to vector<256x256xbf16>
    %cst_28 = arith.constant dense<0.000000e+00> : vector<8x256xf32>
    %41 = tpu.matmul %38, %40, %cst_28 {dimension_numbers = #tpu.dot_dimension_numbers<[1], [0], [0], [1], [0, 0, 1, 1], [], []>} : vector<8x256xbf16>, vector<256x256xbf16>, vector<8x256xf32> -> vector<8x256xf32>
    %c5 = arith.constant 5 : index
    %c0_29 = arith.constant 0 : index
    %42 = vector.load %arg7[%c5, %c0_29] : memref<16x512xf32, #tpu.memory_space<vmem>>, vector<1x256xf32>
    %43 = vector.broadcast %42 : vector<1x256xf32> to vector<8x256xf32>
    %44 = arith.addf %41, %43 : vector<8x256xf32>
    %45 = arith.truncf %44 : vector<8x256xf32> to vector<8x256xbf16>
    %c5_30 = arith.constant 5 : index
    %c0_31 = arith.constant 0 : index
    %c0_32 = arith.constant 0 : index
    %46 = vector.load %arg2[%c5_30, %c0_31, %c0_32] : memref<6x256x256xbf16, #tpu.memory_space<vmem>>, vector<1x256x256xbf16>
    %47 = vector.shape_cast %46 : vector<1x256x256xbf16> to vector<256x256xbf16>
    %cst_33 = arith.constant dense<0.000000e+00> : vector<8x256xf32>
    %48 = tpu.matmul %45, %47, %cst_33 {dimension_numbers = #tpu.dot_dimension_numbers<[1], [0], [0], [1], [0, 0, 1, 1], [], []>} : vector<8x256xbf16>, vector<256x256xbf16>, vector<8x256xf32> -> vector<8x256xf32>
    %c6 = arith.constant 6 : index
    %c0_34 = arith.constant 0 : index
    %49 = vector.load %arg7[%c6, %c0_34] : memref<16x512xf32, #tpu.memory_space<vmem>>, vector<1x256xf32>
    %50 = vector.broadcast %49 : vector<1x256xf32> to vector<8x256xf32>
    %51 = arith.addf %48, %50 : vector<8x256xf32>
    %c0_35 = arith.constant 0 : index
    %c0_36 = arith.constant 0 : index
    %52 = vector.load %arg4[%c0_35, %c0_36] : memref<128x256xbf16, #tpu.memory_space<vmem>>, vector<128x256xbf16>
    %cst_37 = arith.constant dense<0.000000e+00> : vector<8x256xf32>
    %53 = tpu.matmul %4, %52, %cst_37 {dimension_numbers = #tpu.dot_dimension_numbers<[1], [0], [0], [1], [0, 0, 1, 1], [], []>} : vector<8x128xbf16>, vector<128x256xbf16>, vector<8x256xf32> -> vector<8x256xf32>
    %c7 = arith.constant 7 : index
    %c0_38 = arith.constant 0 : index
    %54 = vector.load %arg7[%c7, %c0_38] : memref<16x512xf32, #tpu.memory_space<vmem>>, vector<1x256xf32>
    %55 = vector.broadcast %54 : vector<1x256xf32> to vector<8x256xf32>
    %56 = arith.addf %53, %55 : vector<8x256xf32>
    %c8 = arith.constant 8 : index
    %c0_39 = arith.constant 0 : index
    %57 = vector.load %arg7[%c8, %c0_39] : memref<16x512xf32, #tpu.memory_space<vmem>>, vector<1x256xf32>
    %c9 = arith.constant 9 : index
    %c0_40 = arith.constant 0 : index
    %58 = vector.load %arg7[%c9, %c0_40] : memref<16x512xf32, #tpu.memory_space<vmem>>, vector<1x256xf32>
    %cst_41 = arith.constant dense<0.000000e+00> : vector<256xf32>
    %59 = vector.multi_reduction <add>, %56, %cst_41 [0] : vector<8x256xf32> to vector<256xf32>
    %60 = vector.shape_cast %59 : vector<256xf32> to vector<1x256xf32>
    %cst_42 = arith.constant 8.000000e+00 : f32
    %61 = vector.broadcast %cst_42 : f32 to vector<1x256xf32>
    %62 = arith.divf %60, %61 : vector<1x256xf32>
    %63 = vector.broadcast %62 : vector<1x256xf32> to vector<8x256xf32>
    %64 = arith.subf %56, %63 : vector<8x256xf32>
    %65 = arith.mulf %64, %64 : vector<8x256xf32>
    %cst_43 = arith.constant dense<0.000000e+00> : vector<256xf32>
    %66 = vector.multi_reduction <add>, %65, %cst_43 [0] : vector<8x256xf32> to vector<256xf32>
    %67 = vector.shape_cast %66 : vector<256xf32> to vector<1x256xf32>
    %cst_44 = arith.constant 8.000000e+00 : f32
    %68 = vector.broadcast %cst_44 : f32 to vector<1x256xf32>
    %69 = arith.divf %67, %68 : vector<1x256xf32>
    %cst_45 = arith.constant 9.99999974E-6 : f32
    %70 = vector.broadcast %cst_45 : f32 to vector<1x256xf32>
    %71 = arith.addf %69, %70 : vector<1x256xf32>
    %72 = math.rsqrt %71 : vector<1x256xf32>
    %73 = vector.broadcast %72 : vector<1x256xf32> to vector<8x256xf32>
    %74 = arith.mulf %64, %73 : vector<8x256xf32>
    %75 = vector.broadcast %57 : vector<1x256xf32> to vector<8x256xf32>
    %76 = arith.mulf %74, %75 : vector<8x256xf32>
    %77 = vector.broadcast %58 : vector<1x256xf32> to vector<8x256xf32>
    %78 = arith.addf %76, %77 : vector<8x256xf32>
    %cst_46 = arith.constant 0.000000e+00 : f32
    %79 = vector.broadcast %cst_46 : f32 to vector<8x256xf32>
    %80 = arith.maximumf %78, %79 : vector<8x256xf32>
    %81 = arith.truncf %51 : vector<8x256xf32> to vector<8x256xbf16>
    %c0_47 = arith.constant 0 : index
    %c0_48 = arith.constant 0 : index
    %82 = vector.load %arg3[%c0_47, %c0_48] : memref<256x128xbf16, #tpu.memory_space<vmem>>, vector<256x128xbf16>
    %cst_49 = arith.constant dense<0.000000e+00> : vector<8x128xf32>
    %83 = tpu.matmul %81, %82, %cst_49 {dimension_numbers = #tpu.dot_dimension_numbers<[1], [0], [0], [1], [0, 0, 1, 1], [], []>} : vector<8x256xbf16>, vector<256x128xbf16>, vector<8x128xf32> -> vector<8x128xf32>
    %84 = arith.truncf %80 : vector<8x256xf32> to vector<8x256xbf16>
    %c0_50 = arith.constant 0 : index
    %c0_51 = arith.constant 0 : index
    %85 = vector.load %arg5[%c0_50, %c0_51] : memref<256x128xbf16, #tpu.memory_space<vmem>>, vector<256x128xbf16>
    %cst_52 = arith.constant dense<0.000000e+00> : vector<8x128xf32>
    %86 = tpu.matmul %84, %85, %cst_52 {dimension_numbers = #tpu.dot_dimension_numbers<[1], [0], [0], [1], [0, 0, 1, 1], [], []>} : vector<8x256xbf16>, vector<256x128xbf16>, vector<8x128xf32> -> vector<8x128xf32>
    %87 = arith.addf %83, %86 : vector<8x128xf32>
    %c10 = arith.constant 10 : index
    %c0_53 = arith.constant 0 : index
    %88 = vector.load %arg7[%c10, %c0_53] : memref<16x512xf32, #tpu.memory_space<vmem>>, vector<1x128xf32>
    %89 = vector.broadcast %88 : vector<1x128xf32> to vector<8x128xf32>
    %90 = arith.addf %87, %89 : vector<8x128xf32>
    %91 = arith.truncf %90 : vector<8x128xf32> to vector<8x128xbf16>
    %c0_54 = arith.constant 0 : index
    %c0_55 = arith.constant 0 : index
    %92 = vector.load %arg6[%c0_54, %c0_55] : memref<128x512xbf16, #tpu.memory_space<vmem>>, vector<128x512xbf16>
    %cst_56 = arith.constant dense<0.000000e+00> : vector<8x512xf32>
    %93 = tpu.matmul %91, %92, %cst_56 {dimension_numbers = #tpu.dot_dimension_numbers<[1], [0], [0], [1], [0, 0, 1, 1], [], []>} : vector<8x128xbf16>, vector<128x512xbf16>, vector<8x512xf32> -> vector<8x512xf32>
    %c13 = arith.constant 13 : index
    %c0_57 = arith.constant 0 : index
    %94 = vector.load %arg7[%c13, %c0_57] : memref<16x512xf32, #tpu.memory_space<vmem>>, vector<1x512xf32>
    %95 = vector.broadcast %94 : vector<1x512xf32> to vector<8x512xf32>
    %96 = arith.addf %93, %95 : vector<8x512xf32>
    %97 = tpu.iota {dimensions = array<i32: 1>} : vector<8x512xi32>
    %c384_i32 = arith.constant 384 : i32
    %98 = vector.broadcast %c384_i32 : i32 to vector<8x512xi32>
    %99 = arith.cmpi sge, %97, %98 : vector<8x512xi32>
    %c415_i32 = arith.constant 415 : i32
    %100 = vector.broadcast %c415_i32 : i32 to vector<8x512xi32>
    %101 = arith.cmpi slt, %97, %100 : vector<8x512xi32>
    %102 = arith.negf %96 : vector<8x512xf32>
    %103 = math.exp %102 : vector<8x512xf32>
    %cst_58 = arith.constant 1.000000e+00 : f32
    %104 = vector.broadcast %cst_58 : f32 to vector<8x512xf32>
    %105 = arith.addf %104, %103 : vector<8x512xf32>
    %106 = arith.divf %104, %105 : vector<8x512xf32>
    %cst_59 = arith.constant 0.000000e+00 : f32
    %107 = vector.broadcast %cst_59 : f32 to vector<8x512xf32>
    %108 = arith.select %101, %106, %107 : vector<8x512xi1>, vector<8x512xf32>
    %109 = arith.select %99, %108, %96 : vector<8x512xi1>, vector<8x512xf32>
    %110 = arith.subf %0, %109 : vector<8x512xf32>
    %111 = arith.mulf %110, %110 : vector<8x512xf32>
    %cst_60 = arith.constant 0.000000e+00 : f32
    %112 = vector.broadcast %cst_60 : f32 to vector<8x512xf32>
    %113 = arith.select %99, %111, %112 : vector<8x512xi1>, vector<8x512xf32>
    %114 = vector.shape_cast %113 : vector<8x512xf32> to vector<1x8x512xf32>
    %cst_61 = arith.constant dense<0.000000e+00> : vector<1xf32>
    %115 = vector.multi_reduction <add>, %114, %cst_61 [1, 2] : vector<1x8x512xf32> to vector<1xf32>
    %116 = vector.shape_cast %115 : vector<1xf32> to vector<1x1x1xf32>
    %117 = vector.extract %116[0, 0, 0] : f32 from vector<1x1x1xf32>
    %118 = vector.broadcast %117 : f32 to vector<1x1xf32>
    %cst_62 = arith.constant 1.000000e+00 : f32
    %119 = vector.broadcast %cst_62 : f32 to vector<1x1xf32>
    %120 = arith.mulf %119, %118 : vector<1x1xf32>
    %cst_63 = arith.constant 2.480000e+02 : f32
    %121 = vector.broadcast %cst_63 : f32 to vector<1x1xf32>
    %122 = arith.divf %120, %121 : vector<1x1xf32>
    %cst_64 = arith.constant 0.000000e+00 : f32
    %123 = vector.broadcast %cst_64 : f32 to vector<8x512xf32>
    %124 = arith.select %99, %123, %111 : vector<8x512xi1>, vector<8x512xf32>
    %125 = vector.shape_cast %124 : vector<8x512xf32> to vector<1x8x512xf32>
    %cst_65 = arith.constant dense<0.000000e+00> : vector<1xf32>
    %126 = vector.multi_reduction <add>, %125, %cst_65 [1, 2] : vector<1x8x512xf32> to vector<1xf32>
    %127 = vector.shape_cast %126 : vector<1xf32> to vector<1x1x1xf32>
    %128 = vector.extract %127[0, 0, 0] : f32 from vector<1x1x1xf32>
    %129 = vector.broadcast %128 : f32 to vector<1x1xf32>
    %cst_66 = arith.constant 1.000000e-03 : f32
    %130 = vector.broadcast %cst_66 : f32 to vector<1x1xf32>
    %131 = arith.mulf %130, %129 : vector<1x1xf32>
    %cst_67 = arith.constant 2.480000e+03 : f32
    %132 = vector.broadcast %cst_67 : f32 to vector<1x1xf32>
    %133 = arith.divf %131, %132 : vector<1x1xf32>
    %c11 = arith.constant 11 : index
    %c0_68 = arith.constant 0 : index
    %134 = vector.load %arg7[%c11, %c0_68] : memref<16x512xf32, #tpu.memory_space<vmem>>, vector<1x128xf32>
    %c12 = arith.constant 12 : index
    %c0_69 = arith.constant 0 : index
    %135 = vector.load %arg7[%c12, %c0_69] : memref<16x512xf32, #tpu.memory_space<vmem>>, vector<1x128xf32>
    %cst_70 = arith.constant dense<0.000000e+00> : vector<128xf32>
    %136 = vector.multi_reduction <add>, %90, %cst_70 [0] : vector<8x128xf32> to vector<128xf32>
    %137 = vector.shape_cast %136 : vector<128xf32> to vector<1x128xf32>
    %cst_71 = arith.constant 8.000000e+00 : f32
    %138 = vector.broadcast %cst_71 : f32 to vector<1x128xf32>
    %139 = arith.divf %137, %138 : vector<1x128xf32>
    %140 = vector.broadcast %139 : vector<1x128xf32> to vector<8x128xf32>
    %141 = arith.subf %90, %140 : vector<8x128xf32>
    %142 = arith.mulf %141, %141 : vector<8x128xf32>
    %cst_72 = arith.constant dense<0.000000e+00> : vector<128xf32>
    %143 = vector.multi_reduction <add>, %142, %cst_72 [0] : vector<8x128xf32> to vector<128xf32>
    %144 = vector.shape_cast %143 : vector<128xf32> to vector<1x128xf32>
    %cst_73 = arith.constant 8.000000e+00 : f32
    %145 = vector.broadcast %cst_73 : f32 to vector<1x128xf32>
    %146 = arith.divf %144, %145 : vector<1x128xf32>
    %cst_74 = arith.constant 9.99999974E-6 : f32
    %147 = vector.broadcast %cst_74 : f32 to vector<1x128xf32>
    %148 = arith.addf %146, %147 : vector<1x128xf32>
    %149 = math.rsqrt %148 : vector<1x128xf32>
    %150 = vector.broadcast %149 : vector<1x128xf32> to vector<8x128xf32>
    %151 = arith.mulf %141, %150 : vector<8x128xf32>
    %152 = vector.broadcast %134 : vector<1x128xf32> to vector<8x128xf32>
    %153 = arith.mulf %151, %152 : vector<8x128xf32>
    %154 = vector.broadcast %135 : vector<1x128xf32> to vector<8x128xf32>
    %155 = arith.addf %153, %154 : vector<8x128xf32>
    %cst_75 = arith.constant dense<0.000000e+00> : vector<128x128xf32>
    %156 = tpu.matmul %155, %155, %cst_75 {dimension_numbers = #tpu.dot_dimension_numbers<[0], [0], [1], [1], [0, 1, 1, 1], [], []>} : vector<8x128xf32>, vector<8x128xf32>, vector<128x128xf32> -> vector<128x128xf32>
    %cst_76 = arith.constant 8.000000e+00 : f32
    %157 = vector.broadcast %cst_76 : f32 to vector<128x128xf32>
    %158 = arith.divf %156, %157 : vector<128x128xf32>
    %159 = tpu.iota {dimensions = array<i32: 0>} : vector<128x128xi32>
    %160 = tpu.iota {dimensions = array<i32: 1>} : vector<128x128xi32>
    %c64_i32 = arith.constant 64 : i32
    %161 = vector.broadcast %c64_i32 : i32 to vector<128x128xi32>
    %162 = arith.cmpi slt, %159, %161 : vector<128x128xi32>
    %c64_i32_77 = arith.constant 64 : i32
    %163 = vector.broadcast %c64_i32_77 : i32 to vector<128x128xi32>
    %164 = arith.cmpi sge, %160, %163 : vector<128x128xi32>
    %165 = arith.andi %162, %164 : vector<128x128xi1>
    %c64_i32_78 = arith.constant 64 : i32
    %166 = vector.broadcast %c64_i32_78 : i32 to vector<128x128xi32>
    %167 = arith.addi %159, %166 : vector<128x128xi32>
    %168 = arith.cmpi eq, %160, %167 : vector<128x128xi32>
    %169 = arith.andi %165, %168 : vector<128x128xi1>
    %cst_79 = arith.constant 1.000000e+00 : f32
    %170 = vector.broadcast %cst_79 : f32 to vector<128x128xf32>
    %171 = arith.subf %158, %170 : vector<128x128xf32>
    %172 = arith.mulf %171, %171 : vector<128x128xf32>
    %cst_80 = arith.constant 0.000000e+00 : f32
    %173 = vector.broadcast %cst_80 : f32 to vector<128x128xf32>
    %174 = arith.select %169, %172, %173 : vector<128x128xi1>, vector<128x128xf32>
    %175 = vector.shape_cast %174 : vector<128x128xf32> to vector<1x128x128xf32>
    %cst_81 = arith.constant dense<0.000000e+00> : vector<1xf32>
    %176 = vector.multi_reduction <add>, %175, %cst_81 [1, 2] : vector<1x128x128xf32> to vector<1xf32>
    %177 = vector.shape_cast %176 : vector<1xf32> to vector<1x1x1xf32>
    %178 = vector.extract %177[0, 0, 0] : f32 from vector<1x1x1xf32>
    %179 = vector.broadcast %178 : f32 to vector<1x1xf32>
    %180 = arith.mulf %158, %158 : vector<128x128xf32>
    %cst_82 = arith.constant 0.000000e+00 : f32
    %181 = vector.broadcast %cst_82 : f32 to vector<128x128xf32>
    %182 = arith.select %169, %181, %180 : vector<128x128xi1>, vector<128x128xf32>
    %cst_83 = arith.constant 0.000000e+00 : f32
    %183 = vector.broadcast %cst_83 : f32 to vector<128x128xf32>
    %184 = arith.select %165, %182, %183 : vector<128x128xi1>, vector<128x128xf32>
    %185 = vector.shape_cast %184 : vector<128x128xf32> to vector<1x128x128xf32>
    %cst_84 = arith.constant dense<0.000000e+00> : vector<1xf32>
    %186 = vector.multi_reduction <add>, %185, %cst_84 [1, 2] : vector<1x128x128xf32> to vector<1xf32>
    %187 = vector.shape_cast %186 : vector<1xf32> to vector<1x1x1xf32>
    %188 = vector.extract %187[0, 0, 0] : f32 from vector<1x1x1xf32>
    %189 = vector.broadcast %188 : f32 to vector<1x1xf32>
    %cst_85 = arith.constant 2.500000e-01 : f32
    %190 = vector.broadcast %cst_85 : f32 to vector<1x1xf32>
    %191 = arith.mulf %190, %189 : vector<1x1xf32>
    %192 = arith.addf %179, %191 : vector<1x1xf32>
    %cst_86 = arith.constant 1.000000e+00 : f32
    %193 = vector.broadcast %cst_86 : f32 to vector<1x1xf32>
    %194 = arith.mulf %193, %192 : vector<1x1xf32>
    %195 = arith.addf %122, %133 : vector<1x1xf32>
    %196 = arith.addf %195, %194 : vector<1x1xf32>
    %c0_87 = arith.constant 0 : index
    %c0_88 = arith.constant 0 : index
    %197 = vector.load %arg8[%c0_87, %c0_88] : memref<8x128xf32, #tpu.memory_space<vmem>>, vector<8x128xf32>
    tpu.vector_store %arg8[%c0_87, %c0_88], %90 {strides = array<i32>} : memref<8x128xf32, #tpu.memory_space<vmem>>, vector<8x128xf32>,
    %c0_89 = arith.constant 0 : index
    %c0_90 = arith.constant 0 : index
    %198 = vector.load %arg9[%c0_89, %c0_90] : memref<8x512xf32, #tpu.memory_space<vmem>>, vector<8x512xf32>
    tpu.vector_store %arg9[%c0_89, %c0_90], %109 {strides = array<i32>} : memref<8x512xf32, #tpu.memory_space<vmem>>, vector<8x512xf32>,
    %199 = tpu.iota {dimensions = array<i32: 1>} : vector<1x128xi32>
    %c0_i32 = arith.constant 0 : i32
    %200 = vector.broadcast %c0_i32 : i32 to vector<1x128xi32>
    %201 = arith.cmpi eq, %199, %200 : vector<1x128xi32>
    %cst_91 = arith.constant 0.000000e+00 : f32
    %202 = vector.shape_cast %122 : vector<1x1xf32> to vector<1x1xf32>
    %203 = vector.broadcast %202 : vector<1x1xf32> to vector<1x128xf32>
    %204 = vector.broadcast %cst_91 : f32 to vector<1x128xf32>
    %205 = arith.select %201, %203, %204 : vector<1x128xi1>, vector<1x128xf32>
    %c1_i32 = arith.constant 1 : i32
    %206 = vector.broadcast %c1_i32 : i32 to vector<1x128xi32>
    %207 = arith.cmpi eq, %199, %206 : vector<1x128xi32>
    %cst_92 = arith.constant 0.000000e+00 : f32
    %208 = vector.shape_cast %133 : vector<1x1xf32> to vector<1x1xf32>
    %209 = vector.broadcast %208 : vector<1x1xf32> to vector<1x128xf32>
    %210 = vector.broadcast %cst_92 : f32 to vector<1x128xf32>
    %211 = arith.select %207, %209, %210 : vector<1x128xi1>, vector<1x128xf32>
    %212 = arith.addf %205, %211 : vector<1x128xf32>
    %c2_i32 = arith.constant 2 : i32
    %213 = vector.broadcast %c2_i32 : i32 to vector<1x128xi32>
    %214 = arith.cmpi eq, %199, %213 : vector<1x128xi32>
    %cst_93 = arith.constant 0.000000e+00 : f32
    %215 = vector.shape_cast %194 : vector<1x1xf32> to vector<1x1xf32>
    %216 = vector.broadcast %215 : vector<1x1xf32> to vector<1x128xf32>
    %217 = vector.broadcast %cst_93 : f32 to vector<1x128xf32>
    %218 = arith.select %214, %216, %217 : vector<1x128xi1>, vector<1x128xf32>
    %219 = arith.addf %212, %218 : vector<1x128xf32>
    %c3_i32 = arith.constant 3 : i32
    %220 = vector.broadcast %c3_i32 : i32 to vector<1x128xi32>
    %221 = arith.cmpi eq, %199, %220 : vector<1x128xi32>
    %cst_94 = arith.constant 0.000000e+00 : f32
    %222 = vector.shape_cast %196 : vector<1x1xf32> to vector<1x1xf32>
    %223 = vector.broadcast %222 : vector<1x1xf32> to vector<1x128xf32>
    %224 = vector.broadcast %cst_94 : f32 to vector<1x128xf32>
    %225 = arith.select %221, %223, %224 : vector<1x128xi1>, vector<1x128xf32>
    %226 = arith.addf %219, %225 : vector<1x128xf32>
    %c0_95 = arith.constant 0 : index
    %c0_96 = arith.constant 0 : index
    %227 = vector.load %arg10[%c0_95, %c0_96] : memref<1x128xf32, #tpu.memory_space<vmem>>, vector<1x128xf32>
    tpu.vector_store %arg10[%c0_95, %c0_96], %226 {strides = array<i32>} : memref<1x128xf32, #tpu.memory_space<vmem>>, vector<1x128xf32>,
    return
  }
}

</mosaic_0001>

<bundles_post_ra>
// kernel: embedding_net_forward.1
= control target key start
LH: loop header
LB: loop body
LE: loop exit
PB: predicated region body
PF: predicated region fallthrough
CT: control target
= control target key end

     0   :  { %v4518_v61 = vmov 0   ;;  %vm2924_vm0 = vcmask 64512   ;;  %s5786_s1 = inlined_call_operand.vmem [shape: bf16[384,256], index: 1, kind: input, shape index: {}]   ;;  %s5787_s0 = inlined_call_operand.vmem [shape: f32[8,512], index: 0, kind: input, shape index: {}]   ;;  %s5788_s2 = inlined_call_operand.vmem [shape: bf16[6,256,256], index: 2, kind: input, shape index: {}]   ;;  %s5789_s7 = inlined_call_operand.vmem [shape: f32[16,512], index: 7, kind: input, shape index: {}]   ;;  %s5790_s4 = inlined_call_operand.vmem [shape: bf16[128,256], index: 4, kind: input, shape index: {}]   ;;  %s5791_s5 = inlined_call_operand.vmem [shape: bf16[256,128], index: 5, kind: input, shape index: {}]   ;;  %s5792_s3 = inlined_call_operand.vmem [shape: bf16[256,128], index: 3, kind: input, shape index: {}]   ;;  %s5793_s6 = inlined_call_operand.vmem [shape: bf16[128,512], index: 6, kind: input, shape index: {}]   ;;  %s5794_s8 = inlined_call_operand.vmem [shape: f32[8,128], index: 8, kind: output, shape index: {0}]   ;;  %s5795_s9 = inlined_call_operand.vmem [shape: f32[8,512], index: 9, kind: output, shape index: {1}]   ;;  %s5796_s10 = inlined_call_operand.vmem [shape: f32[1,128], index: 10, kind: output, shape index: {2}]  }
   0x1   :  { %v4041_v0 = vld [vmem:[%s5786_s1 + $0x4] ss:$8 sps:$4 sm:$0xff]   ;;  %v4043_v1 = vld [vmem:[%s5786_s1] ss:$8 sps:$4 sm:$0xff]   ;;  %v4044_v2 = vld [vmem:[%s5786_s1 + $0x14] ss:$8 sps:$4 sm:$0xff]  }
   0x2   :  { %341 = vmatprep.subr.bf16.mxu0 %v4041_v0  ;;  %v4046_v3 = vld [vmem:[%s5786_s1 + $0x10] ss:$8 sps:$4 sm:$0xff]   ;;  %v4047_v4 = vld [vmem:[%s5786_s1 + $0x24] ss:$8 sps:$4 sm:$0xff]   ;;  %v4049_v5 = vld [vmem:[%s5786_s1 + $0x20] ss:$8 sps:$4 sm:$0xff]  }
   0x3   :  { %342 = vmatpush1.bf16.msra.mxu0 %v4043_v1  ;;  %v4050_v6 = vld [vmem:[%s5786_s1 + $0x34] ss:$8 sps:$4 sm:$0xff]   ;;  %v4052_v7 = vld [vmem:[%s5786_s1 + $0x30] ss:$8 sps:$4 sm:$0xff]   ;;  %v4053_v8 = vld [vmem:[%s5786_s1 + $0x44] ss:$8 sps:$4 sm:$0xff]  }
   0x4   :  { %343 = vmatprep.subr.bf16.mxu0 %v4044_v2  ;;  %v4055_v9 = vld [vmem:[%s5786_s1 + $0x40] ss:$8 sps:$4 sm:$0xff]   ;;  %v4056_v10 = vld [vmem:[%s5786_s1 + $0x54] ss:$8 sps:$4 sm:$0xff]   ;;  %v4058_v11 = vld [vmem:[%s5786_s1 + $0x50] ss:$8 sps:$4 sm:$0xff]  }
   0x5   :  { %v4059_v12 = vld [vmem:[%s5786_s1 + $0x64] ss:$8 sps:$4 sm:$0xff]   ;;  %v4061_v15 = vld [vmem:[%s5786_s1 + $0x60] ss:$8 sps:$4 sm:$0xff]   ;;  %v4062_v16 = vld [vmem:[%s5786_s1 + $0x74] ss:$8 sps:$4 sm:$0xff]  }
   0x6   :  { %v34_v13 = vld [vmem:[%s5787_s0 + $0x8] sm:$0xff]  ;;  %v4064_v17 = vld [vmem:[%s5786_s1 + $0x70] ss:$8 sps:$4 sm:$0xff]   ;;  %v4068_v20 = vld [vmem:[%s5786_s1 + $0x94] ss:$8 sps:$4 sm:$0xff]  }
   0x7   :  { %344 = vmatpush1.bf16.msra.mxu0 %v4046_v3  ;;  %v38_v14 = vpack.c.bf16 %v34_v13, %v34_v13  ;;  %v4065_v18 = vld [vmem:[%s5786_s1 + $0x84] ss:$8 sps:$4 sm:$0xff]   ;;  %v4067_v19 = vld [vmem:[%s5786_s1 + $0x80] ss:$8 sps:$4 sm:$0xff]   ;;  %v4070_v23 = vld [vmem:[%s5786_s1 + $0x90] ss:$8 sps:$4 sm:$0xff]  }
   0x8   :  { %345 = vmatprep.subr.bf16.mxu0 %v4047_v4  ;;  %v4113_v21 = vld [vmem:[%s5788_s2 + $0x4] ss:$8 sps:$4 sm:$0xff]   ;;  %v4115_v22 = vld [vmem:[%s5788_s2] ss:$8 sps:$4 sm:$0xff]   ;;  %v4116_v24 = vld [vmem:[%s5788_s2 + $0x14] ss:$8 sps:$4 sm:$0xff]  }
   0x9   :  { %373 = vmatprep.mubr.bf16.mxu0 %v38_v14  ;;  %630 = vmatprep.subr.bf16.mxu1 %v4113_v21  ;;  %v4071_v25 = vld [vmem:[%s5786_s1 + $0xa4] ss:$8 sps:$4 sm:$0xff]   ;;  %v4118_v26 = vld [vmem:[%s5788_s2 + $0x10] ss:$8 sps:$4 sm:$0xff]   ;;  %v4073_v28 = vld [vmem:[%s5786_s1 + $0xa0] ss:$8 sps:$4 sm:$0xff]  }
   0xa   :  { %631 = vmatpush1.bf16.msra.mxu1 %v4115_v22  ;;  %v4119_v27 = vld [vmem:[%s5788_s2 + $0x24] ss:$8 sps:$4 sm:$0xff]   ;;  %v4074_v29 = vld [vmem:[%s5786_s1 + $0xb4] ss:$8 sps:$4 sm:$0xff]   ;;  %v4121_v30 = vld [vmem:[%s5788_s2 + $0x20] ss:$8 sps:$4 sm:$0xff]  }
   0xb   :  { %346 = vmatpush1.bf16.msra.mxu0 %v4049_v5  ;;  %632 = vmatprep.subr.bf16.mxu1 %v4116_v24  ;;  %v4122_v31 = vld [vmem:[%s5788_s2 + $0x34] ss:$8 sps:$4 sm:$0xff]   ;;  %v4076_v32 = vld [vmem:[%s5786_s1 + $0xb0] ss:$8 sps:$4 sm:$0xff]   ;;  %v4077_v33 = vld [vmem:[%s5786_s1 + $0xc4] ss:$8 sps:$4 sm:$0xff]   ;;  %v91_v24 = vlaneseq }
   0xc   :  { %347 = vmatprep.subr.bf16.mxu0 %v4050_v6  ;;  %v4124_v34 = vld [vmem:[%s5788_s2 + $0x30] ss:$8 sps:$4 sm:$0xff]   ;;  %v4125_v35 = vld [vmem:[%s5788_s2 + $0x44] ss:$8 sps:$4 sm:$0xff]   ;;  %v4079_v36 = vld [vmem:[%s5786_s1 + $0xc0] ss:$8 sps:$4 sm:$0xff]  }
   0xd   :  { %v4080_v37 = vld [vmem:[%s5786_s1 + $0xd4] ss:$8 sps:$4 sm:$0xff]   ;;  %v4127_v38 = vld [vmem:[%s5788_s2 + $0x40] ss:$8 sps:$4 sm:$0xff]   ;;  %v4082_v40 = vld [vmem:[%s5786_s1 + $0xd0] ss:$8 sps:$4 sm:$0xff]  }
   0xe   :  { %633 = vmatpush1.bf16.msra.mxu1 %v4118_v26  ;;  %v4128_v39 = vld [vmem:[%s5788_s2 + $0x54] ss:$8 sps:$4 sm:$0xff]   ;;  %v4083_v41 = vld [vmem:[%s5786_s1 + $0xe4] ss:$8 sps:$4 sm:$0xff]   ;;  %v4130_v42 = vld [vmem:[%s5788_s2 + $0x50] ss:$8 sps:$4 sm:$0xff]  }
   0xf   :  { %348 = vmatpush1.bf16.msra.mxu0 %v4052_v7  ;;  %634 = vmatprep.subr.bf16.mxu1 %v4119_v27  ;;  %v4131_v43 = vld [vmem:[%s5788_s2 + $0x64] ss:$8 sps:$4 sm:$0xff]   ;;  %v4085_v44 = vld [vmem:[%s5786_s1 + $0xe0] ss:$8 sps:$4 sm:$0xff]   ;;  %v4086_v45 = vld [vmem:[%s5786_s1 + $0xf4] ss:$8 sps:$4 sm:$0xff]  }
  0x10   :  { %349 = vmatprep.subr.bf16.mxu0 %v4053_v8  ;;  %v4133_v46 = vld [vmem:[%s5788_s2 + $0x60] ss:$8 sps:$4 sm:$0xff]   ;;  %v4134_v47 = vld [vmem:[%s5788_s2 + $0x74] ss:$8 sps:$4 sm:$0xff]   ;;  %v4088_v48 = vld [vmem:[%s5786_s1 + $0xf0] ss:$8 sps:$4 sm:$0xff]  }
  0x11   :  { %v33_v49 = vld [vmem:[%s5787_s0] sm:$0xff]  ;;  %v4136_v51 = vld [vmem:[%s5788_s2 + $0x70] ss:$8 sps:$4 sm:$0xff]   ;;  %v4094_v55 = vld [vmem:[%s5786_s1 + $0x114] ss:$8 sps:$4 sm:$0xff]  }
  0x12   :  { %635 = vmatpush1.bf16.msra.mxu1 %v4121_v30  ;;  %v4091_v50 = vld [vmem:[%s5786_s1 + $0x104] ss:$8 sps:$4 sm:$0xff]   ;;  %v4089_v53 = vld [vmem:[%s5786_s1 + $0x100] ss:$8 sps:$4 sm:$0xff]   ;;  %v37_v54 = vpack.c.bf16 %v33_v49, %v33_v49  ;;  %v4140_v57 = vld [vmem:[%s5788_s2 + $0x94] ss:$8 sps:$4 sm:$0xff]  }
  0x13   :  { %350 = vmatpush1.bf16.msra.mxu0 %v4055_v9  ;;  %636 = vmatprep.subr.bf16.mxu1 %v4122_v31  ;;  %v4137_v52 = vld [vmem:[%s5788_s2 + $0x84] ss:$8 sps:$4 sm:$0xff]   ;;  %v4139_v56 = vld [vmem:[%s5788_s2 + $0x80] ss:$8 sps:$4 sm:$0xff]   ;;  %v4092_v58 = vld [vmem:[%s5786_s1 + $0x110] ss:$8 sps:$4 sm:$0xff]  }
  0x14   :  { %351 = vmatprep.subr.bf16.mxu0 %v4056_v10  ;;  %v4097_v59 = vld [vmem:[%s5786_s1 + $0x124] ss:$8 sps:$4 sm:$0xff]   ;;  %v4142_v60 = vld [vmem:[%s5788_s2 + $0x90] ss:$8 sps:$4 sm:$0xff]   ;;  %v4095_v63 = vld [vmem:[%s5786_s1 + $0x120] ss:$8 sps:$4 sm:$0xff]  }
  0x15   :  { %v4143_v62 = vld [vmem:[%s5788_s2 + $0xa4] ss:$8 sps:$4 sm:$0xff]   ;;  %v4100_v0 = vld [vmem:[%s5786_s1 + $0x134] ss:$8 sps:$4 sm:$0xff]   ;;  %v4145_v1 = vld [vmem:[%s5788_s2 + $0xa0] ss:$8 sps:$4 sm:$0xff]  }
  0x16   :  { %637 = vmatpush1.bf16.msra.mxu1 %v4124_v34  ;;  %v4146_v2 = vld [vmem:[%s5788_s2 + $0xb4] ss:$8 sps:$4 sm:$0xff]   ;;  %v4098_v3 = vld [vmem:[%s5786_s1 + $0x130] ss:$8 sps:$4 sm:$0xff]   ;;  %v4103_v4 = vld [vmem:[%s5786_s1 + $0x144] ss:$8 sps:$4 sm:$0xff]  }
  0x17   :  { %352 = vmatpush1.bf16.msra.mxu0 %v4058_v11  ;;  %638 = vmatprep.subr.bf16.mxu1 %v4125_v35  ;;  %v4148_v5 = vld [vmem:[%s5788_s2 + $0xb0] ss:$8 sps:$4 sm:$0xff]   ;;  %v4149_v6 = vld [vmem:[%s5788_s2 + $0xc4] ss:$8 sps:$4 sm:$0xff]   ;;  %v4101_v7 = vld [vmem:[%s5786_s1 + $0x140] ss:$8 sps:$4 sm:$0xff]  }
  0x18   :  { %353 = vmatprep.subr.bf16.mxu0 %v4059_v12  ;;  %v4106_v8 = vld [vmem:[%s5786_s1 + $0x154] ss:$8 sps:$4 sm:$0xff]   ;;  %v4151_v9 = vld [vmem:[%s5788_s2 + $0xc0] ss:$8 sps:$4 sm:$0xff]   ;;  %v4104_v11 = vld [vmem:[%s5786_s1 + $0x150] ss:$8 sps:$4 sm:$0xff]  }
  0x19   :  { %v4152_v10 = vld [vmem:[%s5788_s2 + $0xd4] ss:$8 sps:$4 sm:$0xff]   ;;  %v4109_v12 = vld [vmem:[%s5786_s1 + $0x164] ss:$8 sps:$4 sm:$0xff]   ;;  %v4154_v13 = vld [vmem:[%s5788_s2 + $0xd0] ss:$8 sps:$4 sm:$0xff]  }
  0x1a   :  { %639 = vmatpush1.bf16.msra.mxu1 %v4127_v38  ;;  %v4155_v14 = vld [vmem:[%s5788_s2 + $0xe4] ss:$8 sps:$4 sm:$0xff]   ;;  %v4158_v21 = vld [vmem:[%s5788_s2 + $0xf4] ss:$8 sps:$4 sm:$0xff]   ;;  %v4160_v22 = vld [vmem:[%s5788_s2 + $0xf0] ss:$8 sps:$4 sm:$0xff]  }
  0x1b   :  { %354 = vmatpush1.bf16.msra.mxu0 %v4061_v15  ;;  %640 = vmatprep.subr.bf16.mxu1 %v4128_v39  ;;  %v4107_v15 = vld [vmem:[%s5786_s1 + $0x160] ss:$8 sps:$4 sm:$0xff]   ;;  %v4176_v49 = vld [vmem:[%s5788_s2 + $0x150] ss:$8 sps:$4 sm:$0xff]  }
  0x1c   :  { %355 = vmatprep.subr.bf16.mxu0 %v4062_v16  ;;  %v4112_v16 = vld [vmem:[%s5786_s1 + $0x174] ss:$8 sps:$4 sm:$0xff]   ;;  %v89_v27 = vld [vmem:[%s5789_s7] ss:$8 sm:$0x3] }
  0x1d   :  { %v4161_v38 = vld [vmem:[%s5788_s2 + $0x100] ss:$8 sps:$4 sm:$0xff]  }
  0x1e   :  { %641 = vmatpush1.bf16.msra.mxu1 %v4130_v42  ;;  %v4169_v42 = vld [vmem:[%s5788_s2 + $0x124] ss:$8 sps:$4 sm:$0xff]  }
  0x1f   :  { %356 = vmatpush1.bf16.msra.mxu0 %v4064_v17  ;;  %642 = vmatprep.subr.bf16.mxu1 %v4131_v43  ;;  %v4110_v17 = vld [vmem:[%s5786_s1 + $0x170] ss:$8 sps:$4 sm:$0xff]   ;;  %v4167_v43 = vld [vmem:[%s5788_s2 + $0x120] ss:$8 sps:$4 sm:$0xff]  }
  0x20   :  { %357 = vmatprep.subr.bf16.mxu0 %v4065_v18  ;;  %v35_v18 = vld [vmem:[%s5787_s0 + $0x10] sm:$0xff] }
  0x22   :  { %643 = vmatpush1.bf16.msra.mxu1 %v4133_v46  ;;  %v4175_v46 = vld [vmem:[%s5788_s2 + $0x144] ss:$8 sps:$4 sm:$0xff]  }
  0x23   :  { %358 = vmatpush1.bf16.msra.mxu0 %v4067_v19  ;;  %644 = vmatprep.subr.bf16.mxu1 %v4134_v47  ;;  %v39_v19 = vpack.c.bf16 %v35_v18, %v35_v18  ;;  %v4173_v47 = vld [vmem:[%s5788_s2 + $0x140] ss:$8 sps:$4 sm:$0xff]   ;;  %v4224_v18 = vld [vmem:[%s5788_s2 + $0x250] ss:$8 sps:$4 sm:$0xff]  }
  0x24   :  { %359 = vmatprep.subr.bf16.mxu0 %v4068_v20  ;;  %v4157_v20 = vld [vmem:[%s5788_s2 + $0xe0] ss:$8 sps:$4 sm:$0xff]  }
  0x26   :  { %645 = vmatpush1.bf16.msra.mxu1 %v4136_v51  ;;  %v4179_v51 = vld [vmem:[%s5788_s2 + $0x160] ss:$8 sps:$4 sm:$0xff]  }
  0x27   :  { %360 = vmatpush1.bf16.msra.mxu0 %v4070_v23  ;;  %646 = vmatprep.subr.bf16.mxu1 %v4137_v52  ;;  %v4163_v23 = vld [vmem:[%s5788_s2 + $0x104] ss:$8 sps:$4 sm:$0xff]   ;;  %v4184_v52 = vld [vmem:[%s5788_s2 + $0x174] ss:$8 sps:$4 sm:$0xff]  }
  0x28   :  { %361 = vmatprep.subr.bf16.mxu0 %v4071_v25  ;;  %v4828_v25 = vshrl.u32 %v91_v24, 7 }
  0x2a   :  { %647 = vmatpush1.bf16.msra.mxu1 %v4139_v56  ;;  %v4831_v26 = vsub.s32 0, %v4828_v25  ;;  %v4190_v56 = vld [vmem:[%s5788_s2 + $0x194] ss:$8 sps:$4 sm:$0xff]  }
  0x2b   :  { %362 = vmatpush1.bf16.msra.mxu0 %v4073_v28  ;;  %648 = vmatprep.subr.bf16.mxu1 %v4140_v57  ;;  %v4837_v28 = vsub.s32 1, %v4828_v25  ;;  %v4188_v57 = vld [vmem:[%s5788_s2 + $0x190] ss:$8 sps:$4 sm:$0xff]  }
  0x2c   :  { %363 = vmatprep.subr.bf16.mxu0 %v4074_v29  ;;  %v94_v29 = vrot.slane %v89_v27, %v4831_v26 }
  0x2d   :  { %v98_v30 = vrot.slane %v89_v27, %v4837_v28  ;;  %v4233_v27 = vld [vmem:[%s5788_s2 + $0x280] ss:$8 sps:$4 sm:$0xff]  }
  0x2e   :  { %649 = vmatpush1.bf16.msra.mxu1 %v4142_v60  ;;  %v4196_v60 = vld [vmem:[%s5788_s2 + $0x1b4] ss:$8 sps:$4 sm:$0xff]  }
  0x2f   :  { %364 = vmatpush1.bf16.msra.mxu0 %v4076_v32  ;;  %650 = vmatprep.subr.bf16.mxu1 %v4143_v62  ;;  %v4194_v62 = vld [vmem:[%s5788_s2 + $0x1b0] ss:$8 sps:$4 sm:$0xff]  }
  0x30   :  { %365 = vmatprep.subr.bf16.mxu0 %v4077_v33 }
  0x32   :  { %651 = vmatpush1.bf16.msra.mxu1 %v4145_v1  ;;  %v4202_v1 = vld [vmem:[%s5788_s2 + $0x1d4] ss:$8 sps:$4 sm:$0xff]  }
  0x33   :  { %366 = vmatpush1.bf16.msra.mxu0 %v4079_v36  ;;  %652 = vmatprep.subr.bf16.mxu1 %v4146_v2  ;;  %v4200_v2 = vld [vmem:[%s5788_s2 + $0x1d0] ss:$8 sps:$4 sm:$0xff]  }
  0x34   :  { %367 = vmatprep.subr.bf16.mxu0 %v4080_v37 }
  0x36   :  { %653 = vmatpush1.bf16.msra.mxu1 %v4148_v5  ;;  %v4208_v5 = vld [vmem:[%s5788_s2 + $0x1f4] ss:$8 sps:$4 sm:$0xff]  }
  0x37   :  { %368 = vmatpush1.bf16.msra.mxu0 %v4082_v40  ;;  %654 = vmatprep.subr.bf16.mxu1 %v4149_v6  ;;  %v4166_v40 = vld [vmem:[%s5788_s2 + $0x114] ss:$8 sps:$4 sm:$0xff]   ;;  %v4206_v6 = vld [vmem:[%s5788_s2 + $0x1f0] ss:$8 sps:$4 sm:$0xff]  }
  0x38   :  { %369 = vmatprep.subr.bf16.mxu0 %v4083_v41  ;;  %v4164_v41 = vld [vmem:[%s5788_s2 + $0x110] ss:$8 sps:$4 sm:$0xff]  }
  0x3a   :  { %655 = vmatpush1.bf16.msra.mxu1 %v4151_v9  ;;  %v4214_v9 = vld [vmem:[%s5788_s2 + $0x214] ss:$8 sps:$4 sm:$0xff]  }
  0x3b   :  { %370 = vmatpush1.bf16.msra.mxu0 %v4085_v44  ;;  %656 = vmatprep.subr.bf16.mxu1 %v4152_v10  ;;  %v4172_v44 = vld [vmem:[%s5788_s2 + $0x134] ss:$8 sps:$4 sm:$0xff]   ;;  %v4212_v10 = vld [vmem:[%s5788_s2 + $0x210] ss:$8 sps:$4 sm:$0xff]  }
  0x3c   :  { %371 = vmatprep.subr.bf16.mxu0 %v4086_v45  ;;  %v4170_v45 = vld [vmem:[%s5788_s2 + $0x130] ss:$8 sps:$4 sm:$0xff]  }
  0x3e   :  { %657 = vmatpush1.bf16.msra.mxu1 %v4154_v13  ;;  %v4220_v13 = vld [vmem:[%s5788_s2 + $0x234] ss:$8 sps:$4 sm:$0xff]  }
  0x3f   :  { %372 = vmatpush1.bf16.msra.mxu0 %v4088_v48  ;;  %658 = vmatprep.subr.bf16.mxu1 %v4155_v14  ;;  %v4178_v48 = vld [vmem:[%s5788_s2 + $0x154] ss:$8 sps:$4 sm:$0xff]   ;;  %v4218_v14 = vld [vmem:[%s5788_s2 + $0x230] ss:$8 sps:$4 sm:$0xff]  }
  0x40   :  { %382 = vmatprep.subr.bf16.mxu0 %v4091_v50  ;;  %v4181_v50 = vld [vmem:[%s5788_s2 + $0x164] ss:$8 sps:$4 sm:$0xff]  }
  0x42   :  { %374 = vmatmul.mubr.bf16.vlgmr.msra.gmra.mrb[0].mxu0 %v37_v54  ;;  %659 = vmatpush1.bf16.msra.mxu1 %v4157_v20  ;;  %v4187_v54 = vld [vmem:[%s5788_s2 + $0x184] ss:$8 sps:$4 sm:$0xff]   ;;  %v4227_v20 = vld [vmem:[%s5788_s2 + $0x260] ss:$8 sps:$4 sm:$0xff]  }
  0x43   :  { %383 = vmatpush1.bf16.msra.mxu0 %v4089_v53  ;;  %414 = vmatprep.mubr.bf16.mxu0 %v4518_v61  ;;  %v4182_v53 = vld [vmem:[%s5788_s2 + $0x170] ss:$8 sps:$4 sm:$0xff]  }
  0x44   :  { %384 = vmatprep.subr.bf16.mxu0 %v4094_v55  ;;  %660 = vmatprep.subr.bf16.mxu1 %v4158_v21  ;;  %v4185_v55 = vld [vmem:[%s5788_s2 + $0x180] ss:$8 sps:$4 sm:$0xff]   ;;  %v4232_v21 = vld [vmem:[%s5788_s2 + $0x274] ss:$8 sps:$4 sm:$0xff]  }
  0x46   :  { %661 = vmatpush1.bf16.msra.mxu1 %v4160_v22  ;;  %v4230_v22 = vld [vmem:[%s5788_s2 + $0x270] ss:$8 sps:$4 sm:$0xff]  }
  0x47   :  { %385 = vmatpush1.bf16.msra.mxu0 %v4092_v58  ;;  %879 = vmatprep.subr.bf16.mxu1 %v4163_v23  ;;  %v4193_v58 = vld [vmem:[%s5788_s2 + $0x1a4] ss:$8 sps:$4 sm:$0xff]  }
  0x48   :  { %386 = vmatprep.subr.bf16.mxu0 %v4097_v59  ;;  %v4191_v59 = vld [vmem:[%s5788_s2 + $0x1a0] ss:$8 sps:$4 sm:$0xff]   ;;  %v4235_v23 = vld [vmem:[%s5788_s2 + $0x284] ss:$8 sps:$4 sm:$0xff]  }
  0x4b   :  { %387 = vmatpush1.bf16.msra.mxu0 %v4095_v63  ;;  %v4199_v63 = vld [vmem:[%s5788_s2 + $0x1c4] ss:$8 sps:$4 sm:$0xff]  }
  0x4c   :  { %388 = vmatprep.subr.bf16.mxu0 %v4100_v0  ;;  %v4197_v0 = vld [vmem:[%s5788_s2 + $0x1c0] ss:$8 sps:$4 sm:$0xff]  }
  0x4f   :  { %389 = vmatpush1.bf16.msra.mxu0 %v4098_v3  ;;  %v4205_v3 = vld [vmem:[%s5788_s2 + $0x1e4] ss:$8 sps:$4 sm:$0xff]  }
  0x50   :  { %390 = vmatprep.subr.bf16.mxu0 %v4103_v4  ;;  %v4203_v4 = vld [vmem:[%s5788_s2 + $0x1e0] ss:$8 sps:$4 sm:$0xff]  }
  0x53   :  { %391 = vmatpush1.bf16.msra.mxu0 %v4101_v7  ;;  %v4209_v7 = vld [vmem:[%s5788_s2 + $0x200] ss:$8 sps:$4 sm:$0xff]  }
  0x54   :  { %392 = vmatprep.subr.bf16.mxu0 %v4106_v8  ;;  %v4211_v8 = vld [vmem:[%s5788_s2 + $0x204] ss:$8 sps:$4 sm:$0xff]  }
  0x57   :  { %393 = vmatpush1.bf16.msra.mxu0 %v4104_v11  ;;  %v4217_v11 = vld [vmem:[%s5788_s2 + $0x224] ss:$8 sps:$4 sm:$0xff]  }
  0x58   :  { %394 = vmatprep.subr.bf16.mxu0 %v4109_v12  ;;  %v4215_v12 = vld [vmem:[%s5788_s2 + $0x220] ss:$8 sps:$4 sm:$0xff]  }
  0x5b   :  { %395 = vmatpush1.bf16.msra.mxu0 %v4107_v15  ;;  %v4223_v15 = vld [vmem:[%s5788_s2 + $0x244] ss:$8 sps:$4 sm:$0xff]  }
  0x5c   :  { %396 = vmatprep.subr.bf16.mxu0 %v4112_v16  ;;  %v4221_v16 = vld [vmem:[%s5788_s2 + $0x240] ss:$8 sps:$4 sm:$0xff]  }
  0x5f   :  { %397 = vmatpush1.bf16.msra.mxu0 %v4110_v17  ;;  %v4226_v17 = vld [vmem:[%s5788_s2 + $0x254] ss:$8 sps:$4 sm:$0xff]  }
  0x60   :  { %1128 = vmatprep.subr.bf16.mxu0 %v4211_v8  ;;  %v4281_v8 = vld [vmem:[%s5788_s2 + $0x380] ss:$8 sps:$4 sm:$0xff]  }
  0x62   :  { %415 = vmatmul.mubr.bf16.vlgmr.msra.gmra.mrb[0].mxu0 %v39_v19  ;;  %v4229_v19 = vld [vmem:[%s5788_s2 + $0x264] ss:$8 sps:$4 sm:$0xff]  }
  0x63   :  { %1129 = vmatpush1.bf16.msra.mxu0 %v4209_v7  ;;  %v4283_v7 = vld [vmem:[%s5788_s2 + $0x384] ss:$8 sps:$4 sm:$0xff]  }
  0x64   :  { %1130 = vmatprep.subr.bf16.mxu0 %v4214_v9  ;;  %v4286_v9 = vld [vmem:[%s5788_s2 + $0x394] ss:$8 sps:$4 sm:$0xff]  }
  0x67   :  { %1131 = vmatpush1.bf16.msra.mxu0 %v4212_v10  ;;  %v4284_v10 = vld [vmem:[%s5788_s2 + $0x390] ss:$8 sps:$4 sm:$0xff]  }
  0x68   :  { %1132 = vmatprep.subr.bf16.mxu0 %v4217_v11  ;;  %v4289_v11 = vld [vmem:[%s5788_s2 + $0x3a4] ss:$8 sps:$4 sm:$0xff]  }
  0x6b   :  { %1133 = vmatpush1.bf16.msra.mxu0 %v4215_v12  ;;  %v4287_v12 = vld [vmem:[%s5788_s2 + $0x3a0] ss:$8 sps:$4 sm:$0xff]  }
  0x6c   :  { %1134 = vmatprep.subr.bf16.mxu0 %v4220_v13  ;;  %v4292_v13 = vld [vmem:[%s5788_s2 + $0x3b4] ss:$8 sps:$4 sm:$0xff]  }
  0x6f   :  { %1135 = vmatpush1.bf16.msra.mxu0 %v4218_v14  ;;  %v4290_v14 = vld [vmem:[%s5788_s2 + $0x3b0] ss:$8 sps:$4 sm:$0xff]  }
  0x70   :  { %1136 = vmatprep.subr.bf16.mxu0 %v4223_v15  ;;  %v4295_v15 = vld [vmem:[%s5788_s2 + $0x3c4] ss:$8 sps:$4 sm:$0xff]  }
  0x73   :  { %1137 = vmatpush1.bf16.msra.mxu0 %v4221_v16  ;;  %v4293_v16 = vld [vmem:[%s5788_s2 + $0x3c0] ss:$8 sps:$4 sm:$0xff]  }
  0x74   :  { %1138 = vmatprep.subr.bf16.mxu0 %v4226_v17  ;;  %v4298_v17 = vld [vmem:[%s5788_s2 + $0x3d4] ss:$8 sps:$4 sm:$0xff]  }
  0x77   :  { %1139 = vmatpush1.bf16.msra.mxu0 %v4224_v18  ;;  %v4296_v18 = vld [vmem:[%s5788_s2 + $0x3d0] ss:$8 sps:$4 sm:$0xff]  }
  0x78   :  { %1140 = vmatprep.subr.bf16.mxu0 %v4229_v19  ;;  %v4301_v19 = vld [vmem:[%s5788_s2 + $0x3e4] ss:$8 sps:$4 sm:$0xff]  }
  0x7b   :  { %1141 = vmatpush1.bf16.msra.mxu0 %v4227_v20  ;;  %v4299_v20 = vld [vmem:[%s5788_s2 + $0x3e0] ss:$8 sps:$4 sm:$0xff]  }
  0x7c   :  { %1142 = vmatprep.subr.bf16.mxu0 %v4232_v21  ;;  %v3523_v21 = vld [vmem:[%s5789_s7 + $0x2] ss:$8 sm:$0x3] }
  0x7f   :  { %1143 = vmatpush1.bf16.msra.mxu0 %v4230_v22  ;;  %v712_v22 = vrot.slane %v3523_v21, %v4831_v26 }
  0x80   :  { %1144 = vmatprep.subr.bf16.mxu0 %v4235_v23  ;;  %v716_v23 = vrot.slane %v3523_v21, %v4837_v28  ;;  %v4382_v21 = vld [vmem:[%s5788_s2 + $0x514] ss:$8 sps:$4 sm:$0xff]  }
  0x83   :  { %1145 = vmatpush1.bf16.msra.mxu0 %v4233_v27 }
 0x135   :  { %v416_v31 = vpop.f32.mrb[0].mxu0 }
 0x136   :  { %v4025_v32 = vadd.f32 %v416_v31, %v94_v29  ;;  %v418_v33 = vpop.f32.mrb[1].mxu0  ;;  %v4238_v29 = vld [vmem:[%s5788_s2 + $0x294] ss:$8 sps:$4 sm:$0xff]   ;;  %v4241_v31 = vld [vmem:[%s5788_s2 + $0x2a4] ss:$8 sps:$4 sm:$0xff]  }
 0x137   :  { %v420_v34 = vpop.f32.mrb[2].mxu0  ;;  %v4026_v35 = vadd.f32 %v418_v33, %v98_v30  ;;  %v4236_v30 = vld [vmem:[%s5788_s2 + $0x290] ss:$8 sps:$4 sm:$0xff]   ;;  %1146 = vmatprep.subr.bf16.mxu0 %v4238_v29  ;;  %v4244_v33 = vld [vmem:[%s5788_s2 + $0x2b4] ss:$8 sps:$4 sm:$0xff]  }
 0x138   :  { %v421_v36 = vpop.f32.mrb[3].mxu0  ;;  %v423_v39 = vpack.c.bf16 %v4025_v32, %v4025_v32  ;;  %1147 = vmatpush1.bf16.msra.mxu0 %v4236_v30  ;;  %v4239_v32 = vld [vmem:[%s5788_s2 + $0x2a0] ss:$8 sps:$4 sm:$0xff]   ;;  %v4242_v34 = vld [vmem:[%s5788_s2 + $0x2b0] ss:$8 sps:$4 sm:$0xff]  }
 0x139   :  { %v424_v37 = vpack.c.bf16 %v4026_v35, %v4026_v35  ;;  %1148 = vmatprep.subr.bf16.mxu0 %v4241_v31  ;;  %v4247_v35 = vld [vmem:[%s5788_s2 + $0x2c4] ss:$8 sps:$4 sm:$0xff]   ;;  %v4245_v36 = vld [vmem:[%s5788_s2 + $0x2c0] ss:$8 sps:$4 sm:$0xff]  }
 0x13b   :  { %662 = vmatprep.mubr.bf16.mxu1 %v424_v37  ;;  %v4250_v37 = vld [vmem:[%s5788_s2 + $0x2d4] ss:$8 sps:$4 sm:$0xff]  }
 0x13c   :  { %663 = vmatmul.mubr.bf16.vlgmr.msra.gmra.mrb[0].mxu1 %v423_v39  ;;  %1149 = vmatpush1.bf16.msra.mxu0 %v4239_v32  ;;  %v4253_v39 = vld [vmem:[%s5788_s2 + $0x2e4] ss:$8 sps:$4 sm:$0xff]  }
 0x13d   :  { %880 = vmatpush1.bf16.msra.mxu1 %v4161_v38  ;;  %1150 = vmatprep.subr.bf16.mxu0 %v4244_v33  ;;  %v4248_v38 = vld [vmem:[%s5788_s2 + $0x2d0] ss:$8 sps:$4 sm:$0xff]  }
 0x13e   :  { %881 = vmatprep.subr.bf16.mxu1 %v4166_v40  ;;  %v4251_v40 = vld [vmem:[%s5788_s2 + $0x2e0] ss:$8 sps:$4 sm:$0xff]  }
 0x140   :  { %1151 = vmatpush1.bf16.msra.mxu0 %v4242_v34 }
 0x141   :  { %882 = vmatpush1.bf16.msra.mxu1 %v4164_v41  ;;  %1152 = vmatprep.subr.bf16.mxu0 %v4247_v35  ;;  %v3458_v41 = vld [vmem:[%s5789_s7 + $0x1] ss:$8 sm:$0x3] }
 0x142   :  { %883 = vmatprep.subr.bf16.mxu1 %v4169_v42  ;;  %v463_v42 = vrot.slane %v3458_v41, %v4831_v26 }
 0x144   :  { %1153 = vmatpush1.bf16.msra.mxu0 %v4245_v36  ;;  %v4304_v36 = vld [vmem:[%s5788_s2 + $0x3f4] ss:$8 sps:$4 sm:$0xff]  }
 0x145   :  { %884 = vmatpush1.bf16.msra.mxu1 %v4167_v43  ;;  %1154 = vmatprep.subr.bf16.mxu0 %v4250_v37  ;;  %v467_v43 = vrot.slane %v3458_v41, %v4837_v28  ;;  %v4302_v37 = vld [vmem:[%s5788_s2 + $0x3f0] ss:$8 sps:$4 sm:$0xff]  }
 0x146   :  { %885 = vmatprep.subr.bf16.mxu1 %v4172_v44  ;;  %v4308_v41 = vld [vmem:[%s5788_s2 + $0x410] ss:$8 sps:$4 sm:$0xff]  }
 0x148   :  { %1155 = vmatpush1.bf16.msra.mxu0 %v4248_v38  ;;  %v4305_v38 = vld [vmem:[%s5788_s2 + $0x400] ss:$8 sps:$4 sm:$0xff]  }
 0x149   :  { %886 = vmatpush1.bf16.msra.mxu1 %v4170_v45  ;;  %1156 = vmatprep.subr.bf16.mxu0 %v4253_v39  ;;  %v4307_v39 = vld [vmem:[%s5788_s2 + $0x404] ss:$8 sps:$4 sm:$0xff]  }
 0x14a   :  { %887 = vmatprep.subr.bf16.mxu1 %v4175_v46 }
 0x14c   :  { %1157 = vmatpush1.bf16.msra.mxu0 %v4251_v40  ;;  %v4310_v40 = vld [vmem:[%s5788_s2 + $0x414] ss:$8 sps:$4 sm:$0xff]  }
 0x14d   :  { %888 = vmatpush1.bf16.msra.mxu1 %v4173_v47 }
 0x14e   :  { %889 = vmatprep.subr.bf16.mxu1 %v4178_v48 }
 0x151   :  { %890 = vmatpush1.bf16.msra.mxu1 %v4176_v49 }
 0x152   :  { %891 = vmatprep.subr.bf16.mxu1 %v4181_v50 }
 0x155   :  { %892 = vmatpush1.bf16.msra.mxu1 %v4179_v51 }
 0x156   :  { %893 = vmatprep.subr.bf16.mxu1 %v4184_v52  ;;  %v4256_v52 = vld [vmem:[%s5788_s2 + $0x2f4] ss:$8 sps:$4 sm:$0xff]  }
 0x157   :  { %1158 = vmatprep.subr.bf16.mxu0 %v4256_v52  ;;  %v4328_v52 = vld [vmem:[%s5788_s2 + $0x474] ss:$8 sps:$4 sm:$0xff]  }
 0x159   :  { %894 = vmatpush1.bf16.msra.mxu1 %v4182_v53  ;;  %v4254_v53 = vld [vmem:[%s5788_s2 + $0x2f0] ss:$8 sps:$4 sm:$0xff]  }
 0x15a   :  { %895 = vmatprep.subr.bf16.mxu1 %v4187_v54  ;;  %1159 = vmatpush1.bf16.msra.mxu0 %v4254_v53  ;;  %v4257_v54 = vld [vmem:[%s5788_s2 + $0x300] ss:$8 sps:$4 sm:$0xff]   ;;  %v4326_v53 = vld [vmem:[%s5788_s2 + $0x470] ss:$8 sps:$4 sm:$0xff]  }
 0x15b   :  { %1626 = vmatprep.subr.bf16.mxu0 %v4307_v39  ;;  %v4403_v39 = vld [vmem:[%s5788_s2 + $0x584] ss:$8 sps:$4 sm:$0xff]  }
 0x15d   :  { %896 = vmatpush1.bf16.msra.mxu1 %v4185_v55  ;;  %v4259_v55 = vld [vmem:[%s5788_s2 + $0x304] ss:$8 sps:$4 sm:$0xff]  }
 0x15e   :  { %897 = vmatprep.subr.bf16.mxu1 %v4190_v56  ;;  %v4262_v56 = vld [vmem:[%s5788_s2 + $0x314] ss:$8 sps:$4 sm:$0xff]  }
 0x161   :  { %898 = vmatpush1.bf16.msra.mxu1 %v4188_v57  ;;  %v4260_v57 = vld [vmem:[%s5788_s2 + $0x310] ss:$8 sps:$4 sm:$0xff]  }
 0x162   :  { %899 = vmatprep.subr.bf16.mxu1 %v4193_v58  ;;  %v4265_v58 = vld [vmem:[%s5788_s2 + $0x324] ss:$8 sps:$4 sm:$0xff]  }
 0x165   :  { %900 = vmatpush1.bf16.msra.mxu1 %v4191_v59  ;;  %v4263_v59 = vld [vmem:[%s5788_s2 + $0x320] ss:$8 sps:$4 sm:$0xff]  }
 0x166   :  { %901 = vmatprep.subr.bf16.mxu1 %v4196_v60  ;;  %v4268_v60 = vld [vmem:[%s5788_s2 + $0x334] ss:$8 sps:$4 sm:$0xff]  }
 0x169   :  { %902 = vmatpush1.bf16.msra.mxu1 %v4194_v62  ;;  %v4266_v62 = vld [vmem:[%s5788_s2 + $0x330] ss:$8 sps:$4 sm:$0xff]  }
 0x16a   :  { %903 = vmatprep.subr.bf16.mxu1 %v4199_v63  ;;  %v4271_v63 = vld [vmem:[%s5788_s2 + $0x344] ss:$8 sps:$4 sm:$0xff]  }
 0x16d   :  { %904 = vmatpush1.bf16.msra.mxu1 %v4197_v0  ;;  %v4269_v0 = vld [vmem:[%s5788_s2 + $0x340] ss:$8 sps:$4 sm:$0xff]  }
 0x16e   :  { %905 = vmatprep.subr.bf16.mxu1 %v4202_v1  ;;  %v4274_v1 = vld [vmem:[%s5788_s2 + $0x354] ss:$8 sps:$4 sm:$0xff]  }
 0x171   :  { %906 = vmatpush1.bf16.msra.mxu1 %v4200_v2  ;;  %v4272_v2 = vld [vmem:[%s5788_s2 + $0x350] ss:$8 sps:$4 sm:$0xff]  }
 0x172   :  { %907 = vmatprep.subr.bf16.mxu1 %v4205_v3  ;;  %v4277_v3 = vld [vmem:[%s5788_s2 + $0x364] ss:$8 sps:$4 sm:$0xff]  }
 0x175   :  { %908 = vmatpush1.bf16.msra.mxu1 %v4203_v4  ;;  %v4275_v4 = vld [vmem:[%s5788_s2 + $0x360] ss:$8 sps:$4 sm:$0xff]  }
 0x176   :  { %909 = vmatprep.subr.bf16.mxu1 %v4208_v5  ;;  %v4280_v5 = vld [vmem:[%s5788_s2 + $0x374] ss:$8 sps:$4 sm:$0xff]  }
 0x179   :  { %910 = vmatpush1.bf16.msra.mxu1 %v4206_v6  ;;  %v4278_v6 = vld [vmem:[%s5788_s2 + $0x370] ss:$8 sps:$4 sm:$0xff]  }
 0x17a   :  { %1377 = vmatprep.subr.bf16.mxu1 %v4259_v55  ;;  %v4329_v55 = vld [vmem:[%s5788_s2 + $0x480] ss:$8 sps:$4 sm:$0xff]  }
 0x20f   :  { %v664_v44 = vpop.f32.mrb[0].mxu1 }
 0x210   :  { %v665_v45 = vadd.f32 %v664_v44, %v463_v42  ;;  %v666_v46 = vpop.f32.mrb[1].mxu1  ;;  %v4313_v42 = vld [vmem:[%s5788_s2 + $0x424] ss:$8 sps:$4 sm:$0xff]   ;;  %v4316_v44 = vld [vmem:[%s5788_s2 + $0x434] ss:$8 sps:$4 sm:$0xff]  }
 0x211   :  { %v667_v47 = vadd.f32 %v666_v46, %v467_v43  ;;  %v668_v48 = vpop.f32.mrb[2].mxu1  ;;  %v4311_v43 = vld [vmem:[%s5788_s2 + $0x420] ss:$8 sps:$4 sm:$0xff]   ;;  %v4319_v46 = vld [vmem:[%s5788_s2 + $0x444] ss:$8 sps:$4 sm:$0xff]  }
 0x212   :  { %v669_v49 = vpop.f32.mrb[3].mxu1  ;;  %v671_v51 = vpack.c.bf16 %v665_v45, %v665_v45  ;;  %v4314_v45 = vld [vmem:[%s5788_s2 + $0x430] ss:$8 sps:$4 sm:$0xff]   ;;  %v4322_v48 = vld [vmem:[%s5788_s2 + $0x454] ss:$8 sps:$4 sm:$0xff]  }
 0x213   :  { %v672_v50 = vpack.c.bf16 %v667_v47, %v667_v47  ;;  %v4317_v47 = vld [vmem:[%s5788_s2 + $0x440] ss:$8 sps:$4 sm:$0xff]   ;;  %v4320_v49 = vld [vmem:[%s5788_s2 + $0x450] ss:$8 sps:$4 sm:$0xff]  }
 0x215   :  { %911 = vmatprep.mubr.bf16.mxu1 %v672_v50  ;;  %v4325_v50 = vld [vmem:[%s5788_s2 + $0x464] ss:$8 sps:$4 sm:$0xff]  }
 0x216   :  { %912 = vmatmul.mubr.bf16.vlgmr.msra.gmra.mrb[4].mxu1 %v671_v51  ;;  %v4323_v51 = vld [vmem:[%s5788_s2 + $0x460] ss:$8 sps:$4 sm:$0xff]  }
 0x217   :  { %1378 = vmatpush1.bf16.msra.mxu1 %v4257_v54  ;;  %v4331_v54 = vld [vmem:[%s5788_s2 + $0x484] ss:$8 sps:$4 sm:$0xff]  }
 0x218   :  { %1379 = vmatprep.subr.bf16.mxu1 %v4262_v56  ;;  %v4334_v56 = vld [vmem:[%s5788_s2 + $0x494] ss:$8 sps:$4 sm:$0xff]  }
 0x21b   :  { %1380 = vmatpush1.bf16.msra.mxu1 %v4260_v57  ;;  %v4332_v57 = vld [vmem:[%s5788_s2 + $0x490] ss:$8 sps:$4 sm:$0xff]  }
 0x21c   :  { %1381 = vmatprep.subr.bf16.mxu1 %v4265_v58  ;;  %v4337_v58 = vld [vmem:[%s5788_s2 + $0x4a4] ss:$8 sps:$4 sm:$0xff]  }
 0x21f   :  { %1382 = vmatpush1.bf16.msra.mxu1 %v4263_v59  ;;  %v4335_v59 = vld [vmem:[%s5788_s2 + $0x4a0] ss:$8 sps:$4 sm:$0xff]  }
 0x220   :  { %1383 = vmatprep.subr.bf16.mxu1 %v4268_v60  ;;  %v4340_v60 = vld [vmem:[%s5788_s2 + $0x4b4] ss:$8 sps:$4 sm:$0xff]  }
 0x223   :  { %1384 = vmatpush1.bf16.msra.mxu1 %v4266_v62  ;;  %v4338_v62 = vld [vmem:[%s5788_s2 + $0x4b0] ss:$8 sps:$4 sm:$0xff]  }
 0x224   :  { %1385 = vmatprep.subr.bf16.mxu1 %v4271_v63  ;;  %v4343_v63 = vld [vmem:[%s5788_s2 + $0x4c4] ss:$8 sps:$4 sm:$0xff]  }
 0x227   :  { %1386 = vmatpush1.bf16.msra.mxu1 %v4269_v0  ;;  %v4341_v0 = vld [vmem:[%s5788_s2 + $0x4c0] ss:$8 sps:$4 sm:$0xff]  }
 0x228   :  { %1387 = vmatprep.subr.bf16.mxu1 %v4274_v1  ;;  %v4346_v1 = vld [vmem:[%s5788_s2 + $0x4d4] ss:$8 sps:$4 sm:$0xff]  }
 0x22b   :  { %1388 = vmatpush1.bf16.msra.mxu1 %v4272_v2  ;;  %v4344_v2 = vld [vmem:[%s5788_s2 + $0x4d0] ss:$8 sps:$4 sm:$0xff]  }
 0x22c   :  { %1389 = vmatprep.subr.bf16.mxu1 %v4277_v3  ;;  %v4349_v3 = vld [vmem:[%s5788_s2 + $0x4e4] ss:$8 sps:$4 sm:$0xff]  }
 0x22f   :  { %1390 = vmatpush1.bf16.msra.mxu1 %v4275_v4  ;;  %v4347_v4 = vld [vmem:[%s5788_s2 + $0x4e0] ss:$8 sps:$4 sm:$0xff]  }
 0x230   :  { %1391 = vmatprep.subr.bf16.mxu1 %v4280_v5  ;;  %v3588_v5 = vld [vmem:[%s5789_s7 + $0x3] ss:$8 sm:$0x3] }
 0x233   :  { %1392 = vmatpush1.bf16.msra.mxu1 %v4278_v6  ;;  %v961_v6 = vrot.slane %v3588_v5, %v4831_v26 }
 0x234   :  { %1393 = vmatprep.subr.bf16.mxu1 %v4283_v7  ;;  %v965_v7 = vrot.slane %v3588_v5, %v4837_v28  ;;  %v4359_v5 = vld [vmem:[%s5790_s4 + $0x20] ss:$8 sps:$4 sm:$0xff]  }
 0x237   :  { %1394 = vmatpush1.bf16.msra.mxu1 %v4281_v8 }
 0x238   :  { %1395 = vmatprep.subr.bf16.mxu1 %v4286_v9 }
 0x23b   :  { %1396 = vmatpush1.bf16.msra.mxu1 %v4284_v10 }
 0x23c   :  { %1397 = vmatprep.subr.bf16.mxu1 %v4289_v11 }
 0x23f   :  { %1398 = vmatpush1.bf16.msra.mxu1 %v4287_v12 }
 0x240   :  { %1399 = vmatprep.subr.bf16.mxu1 %v4292_v13 }
 0x243   :  { %1400 = vmatpush1.bf16.msra.mxu1 %v4290_v14 }
 0x244   :  { %1401 = vmatprep.subr.bf16.mxu1 %v4295_v15 }
 0x247   :  { %1402 = vmatpush1.bf16.msra.mxu1 %v4293_v16  ;;  %v4352_v16 = vld [vmem:[%s5788_s2 + $0x4f4] ss:$8 sps:$4 sm:$0xff]  }
 0x248   :  { %1403 = vmatprep.subr.bf16.mxu1 %v4298_v17  ;;  %v4350_v17 = vld [vmem:[%s5788_s2 + $0x4f0] ss:$8 sps:$4 sm:$0xff]  }
 0x24b   :  { %1404 = vmatpush1.bf16.msra.mxu1 %v4296_v18  ;;  %v4355_v18 = vld [vmem:[%s5790_s4 + $0x4] ss:$8 sps:$4 sm:$0xff]  }
 0x24c   :  { %1405 = vmatprep.subr.bf16.mxu1 %v4301_v19  ;;  %v4377_v19 = vld [vmem:[%s5788_s2 + $0x500] ss:$8 sps:$4 sm:$0xff]  }
 0x24f   :  { %1406 = vmatpush1.bf16.msra.mxu1 %v4299_v20  ;;  %v4379_v20 = vld [vmem:[%s5788_s2 + $0x504] ss:$8 sps:$4 sm:$0xff]  }
 0x250   :  { %1407 = vmatprep.subr.bf16.mxu1 %v4304_v36  ;;  %v4395_v36 = vld [vmem:[%s5788_s2 + $0x560] ss:$8 sps:$4 sm:$0xff]  }
 0x253   :  { %1408 = vmatpush1.bf16.msra.mxu1 %v4302_v37  ;;  %v4400_v37 = vld [vmem:[%s5788_s2 + $0x574] ss:$8 sps:$4 sm:$0xff]  }
 0x254   :  { %1875 = vmatprep.subr.bf16.mxu1 %v4379_v20  ;;  %v4425_v20 = vld [vmem:[%s5791_s5 + $0x40] sm:$0xff]  }
 0x2e9   :  { %v913_v27 = vpop.f32.mrb[4].mxu1 }
 0x2ea   :  { %v914_v29 = vadd.f32 %v913_v27, %v712_v22  ;;  %v915_v30 = vpop.f32.mrb[5].mxu1  ;;  %v4380_v22 = vld [vmem:[%s5788_s2 + $0x510] ss:$8 sps:$4 sm:$0xff]   ;;  %v4383_v27 = vld [vmem:[%s5788_s2 + $0x520] ss:$8 sps:$4 sm:$0xff]  }
 0x2eb   :  { %v916_v31 = vadd.f32 %v915_v30, %v716_v23  ;;  %v917_v32 = vpop.f32.mrb[6].mxu1  ;;  %v4385_v23 = vld [vmem:[%s5788_s2 + $0x524] ss:$8 sps:$4 sm:$0xff]   ;;  %v4386_v30 = vld [vmem:[%s5788_s2 + $0x530] ss:$8 sps:$4 sm:$0xff]  }
 0x2ec   :  { %v918_v33 = vpop.f32.mrb[7].mxu1  ;;  %v920_v35 = vpack.c.bf16 %v914_v29, %v914_v29  ;;  %v4388_v29 = vld [vmem:[%s5788_s2 + $0x534] ss:$8 sps:$4 sm:$0xff]   ;;  %v4389_v32 = vld [vmem:[%s5788_s2 + $0x540] ss:$8 sps:$4 sm:$0xff]  }
 0x2ed   :  { %v921_v34 = vpack.c.bf16 %v916_v31, %v916_v31  ;;  %v4391_v31 = vld [vmem:[%s5788_s2 + $0x544] ss:$8 sps:$4 sm:$0xff]   ;;  %v4394_v33 = vld [vmem:[%s5788_s2 + $0x554] ss:$8 sps:$4 sm:$0xff]  }
 0x2ef   :  { %1160 = vmatprep.mubr.bf16.mxu0 %v921_v34  ;;  %v4392_v34 = vld [vmem:[%s5788_s2 + $0x550] ss:$8 sps:$4 sm:$0xff]  }
 0x2f0   :  { %1161 = vmatmul.mubr.bf16.vlgmr.msra.gmra.mrb[4].mxu0 %v920_v35  ;;  %v4397_v35 = vld [vmem:[%s5788_s2 + $0x564] ss:$8 sps:$4 sm:$0xff]  }
 0x2f1   :  { %1627 = vmatpush1.bf16.msra.mxu0 %v4305_v38  ;;  %v4398_v38 = vld [vmem:[%s5788_s2 + $0x570] ss:$8 sps:$4 sm:$0xff]  }
 0x2f2   :  { %1628 = vmatprep.subr.bf16.mxu0 %v4310_v40  ;;  %v4401_v40 = vld [vmem:[%s5788_s2 + $0x580] ss:$8 sps:$4 sm:$0xff]  }
 0x2f5   :  { %1629 = vmatpush1.bf16.msra.mxu0 %v4308_v41  ;;  %v4406_v41 = vld [vmem:[%s5788_s2 + $0x594] ss:$8 sps:$4 sm:$0xff]  }
 0x2f6   :  { %1630 = vmatprep.subr.bf16.mxu0 %v4313_v42  ;;  %v4404_v42 = vld [vmem:[%s5788_s2 + $0x590] ss:$8 sps:$4 sm:$0xff]  }
 0x2f9   :  { %1631 = vmatpush1.bf16.msra.mxu0 %v4311_v43  ;;  %v4409_v43 = vld [vmem:[%s5788_s2 + $0x5a4] ss:$8 sps:$4 sm:$0xff]  }
 0x2fa   :  { %1632 = vmatprep.subr.bf16.mxu0 %v4316_v44  ;;  %v4407_v44 = vld [vmem:[%s5788_s2 + $0x5a0] ss:$8 sps:$4 sm:$0xff]  }
 0x2fd   :  { %1633 = vmatpush1.bf16.msra.mxu0 %v4314_v45  ;;  %v4412_v45 = vld [vmem:[%s5788_s2 + $0x5b4] ss:$8 sps:$4 sm:$0xff]  }
 0x2fe   :  { %1634 = vmatprep.subr.bf16.mxu0 %v4319_v46  ;;  %v4410_v46 = vld [vmem:[%s5788_s2 + $0x5b0] ss:$8 sps:$4 sm:$0xff]  }
 0x301   :  { %1635 = vmatpush1.bf16.msra.mxu0 %v4317_v47  ;;  %v4415_v47 = vld [vmem:[%s5788_s2 + $0x5c4] ss:$8 sps:$4 sm:$0xff]  }
 0x302   :  { %1636 = vmatprep.subr.bf16.mxu0 %v4322_v48  ;;  %v4413_v48 = vld [vmem:[%s5788_s2 + $0x5c0] ss:$8 sps:$4 sm:$0xff]  }
 0x305   :  { %1637 = vmatpush1.bf16.msra.mxu0 %v4320_v49  ;;  %v4418_v49 = vld [vmem:[%s5788_s2 + $0x5d4] ss:$8 sps:$4 sm:$0xff]  }
 0x306   :  { %1638 = vmatprep.subr.bf16.mxu0 %v4325_v50  ;;  %v4416_v50 = vld [vmem:[%s5788_s2 + $0x5d0] ss:$8 sps:$4 sm:$0xff]  }
 0x309   :  { %1639 = vmatpush1.bf16.msra.mxu0 %v4323_v51  ;;  %v4421_v51 = vld [vmem:[%s5788_s2 + $0x5e4] ss:$8 sps:$4 sm:$0xff]  }
 0x30a   :  { %1640 = vmatprep.subr.bf16.mxu0 %v4328_v52  ;;  %v4419_v52 = vld [vmem:[%s5788_s2 + $0x5e0] ss:$8 sps:$4 sm:$0xff]  }
 0x30d   :  { %1641 = vmatpush1.bf16.msra.mxu0 %v4326_v53  ;;  %v3653_v53 = vld [vmem:[%s5789_s7 + $0x4] ss:$8 sm:$0x3] }
 0x30e   :  { %1642 = vmatprep.subr.bf16.mxu0 %v4331_v54  ;;  %v1210_v54 = vrot.slane %v3653_v53, %v4831_v26 }
 0x311   :  { %1643 = vmatpush1.bf16.msra.mxu0 %v4329_v55  ;;  %v1214_v55 = vrot.slane %v3653_v53, %v4837_v28  ;;  %v4443_v53 = vld [vmem:[%s5792_s3 + $0x48] sm:$0xff]  }
 0x312   :  { %1644 = vmatprep.subr.bf16.mxu0 %v4334_v56 }
 0x315   :  { %1645 = vmatpush1.bf16.msra.mxu0 %v4332_v57 }
 0x316   :  { %1646 = vmatprep.subr.bf16.mxu0 %v4337_v58 }
 0x319   :  { %1647 = vmatpush1.bf16.msra.mxu0 %v4335_v59 }
 0x31a   :  { %1648 = vmatprep.subr.bf16.mxu0 %v4340_v60 }
 0x31d   :  { %1649 = vmatpush1.bf16.msra.mxu0 %v4338_v62 }
 0x31e   :  { %1650 = vmatprep.subr.bf16.mxu0 %v4343_v63 }
 0x321   :  { %1651 = vmatpush1.bf16.msra.mxu0 %v4341_v0  ;;  %v4353_v0 = vld [vmem:[%s5790_s4] ss:$8 sps:$4 sm:$0xff]  }
 0x322   :  { %1652 = vmatprep.subr.bf16.mxu0 %v4346_v1 }
 0x325   :  { %1653 = vmatpush1.bf16.msra.mxu0 %v4344_v2  ;;  %v4358_v2 = vld [vmem:[%s5790_s4 + $0x14] ss:$8 sps:$4 sm:$0xff]  }
 0x326   :  { %1654 = vmatprep.subr.bf16.mxu0 %v4349_v3  ;;  %v4356_v3 = vld [vmem:[%s5790_s4 + $0x10] ss:$8 sps:$4 sm:$0xff]  }
 0x329   :  { %1655 = vmatpush1.bf16.msra.mxu0 %v4347_v4  ;;  %v4361_v4 = vld [vmem:[%s5790_s4 + $0x24] ss:$8 sps:$4 sm:$0xff]  }
 0x32a   :  { %1656 = vmatprep.subr.bf16.mxu0 %v4352_v16  ;;  %v5384_v16 = vld [vmem:[%s5787_s0 + $0x18] sm:$0xff] }
 0x32d   :  { %1657 = vmatpush1.bf16.msra.mxu0 %v4350_v17  ;;  %v40_v17 = vpack.c.bf16 %v5384_v16, %v5384_v16 }
 0x32e   :  { %2025 = vmatprep.subr.bf16.mxu0 %v4355_v18  ;;  %v4424_v18 = vld [vmem:[%s5788_s2 + $0x5f4] ss:$8 sps:$4 sm:$0xff]  }
 0x3c3   :  { %v1162_v8 = vpop.f32.mrb[4].mxu0 }
 0x3c4   :  { %v1163_v9 = vadd.f32 %v1162_v8, %v961_v6  ;;  %v1164_v10 = vpop.f32.mrb[5].mxu0  ;;  %v4364_v6 = vld [vmem:[%s5790_s4 + $0x34] ss:$8 sps:$4 sm:$0xff]   ;;  %v4367_v8 = vld [vmem:[%s5790_s4 + $0x44] ss:$8 sps:$4 sm:$0xff]  }
 0x3c5   :  { %v1165_v11 = vadd.f32 %v1164_v10, %v965_v7  ;;  %v1166_v12 = vpop.f32.mrb[6].mxu0  ;;  %v4362_v7 = vld [vmem:[%s5790_s4 + $0x30] ss:$8 sps:$4 sm:$0xff]   ;;  %v4370_v10 = vld [vmem:[%s5790_s4 + $0x54] ss:$8 sps:$4 sm:$0xff]  }
 0x3c6   :  { %v1167_v13 = vpop.f32.mrb[7].mxu0  ;;  %v1169_v15 = vpack.c.bf16 %v1163_v9, %v1163_v9  ;;  %v4365_v9 = vld [vmem:[%s5790_s4 + $0x40] ss:$8 sps:$4 sm:$0xff]   ;;  %v4373_v12 = vld [vmem:[%s5790_s4 + $0x64] ss:$8 sps:$4 sm:$0xff]  }
 0x3c7   :  { %v1170_v14 = vpack.c.bf16 %v1165_v11, %v1165_v11  ;;  %v4368_v11 = vld [vmem:[%s5790_s4 + $0x50] ss:$8 sps:$4 sm:$0xff]   ;;  %v4371_v13 = vld [vmem:[%s5790_s4 + $0x60] ss:$8 sps:$4 sm:$0xff]  }
 0x3c9   :  { %1409 = vmatprep.mubr.bf16.mxu1 %v1170_v14  ;;  %v4376_v14 = vld [vmem:[%s5790_s4 + $0x74] ss:$8 sps:$4 sm:$0xff]  }
 0x3ca   :  { %1410 = vmatmul.mubr.bf16.vlgmr.msra.gmra.mrb[8].mxu1 %v1169_v15  ;;  %v4374_v15 = vld [vmem:[%s5790_s4 + $0x70] ss:$8 sps:$4 sm:$0xff]  }
 0x3cb   :  { %1876 = vmatpush1.bf16.msra.mxu1 %v4377_v19  ;;  %v4422_v19 = vld [vmem:[%s5788_s2 + $0x5f0] ss:$8 sps:$4 sm:$0xff]  }
 0x3cc   :  { %1877 = vmatprep.subr.bf16.mxu1 %v4382_v21  ;;  %v4426_v21 = vld [vmem:[%s5791_s5] sm:$0xff]  }
 0x3cf   :  { %1878 = vmatpush1.bf16.msra.mxu1 %v4380_v22  ;;  %v4427_v22 = vld [vmem:[%s5791_s5 + $0x48] sm:$0xff]  }
 0x3d0   :  { %1879 = vmatprep.subr.bf16.mxu1 %v4385_v23  ;;  %v4428_v23 = vld [vmem:[%s5791_s5 + $0x8] sm:$0xff]  }
 0x3d3   :  { %1880 = vmatpush1.bf16.msra.mxu1 %v4383_v27  ;;  %v4429_v27 = vld [vmem:[%s5791_s5 + $0x50] sm:$0xff]  }
 0x3d4   :  { %1881 = vmatprep.subr.bf16.mxu1 %v4388_v29  ;;  %v4430_v29 = vld [vmem:[%s5791_s5 + $0x10] sm:$0xff]  }
 0x3d7   :  { %1882 = vmatpush1.bf16.msra.mxu1 %v4386_v30  ;;  %v4431_v30 = vld [vmem:[%s5791_s5 + $0x58] sm:$0xff]  }
 0x3d8   :  { %1883 = vmatprep.subr.bf16.mxu1 %v4391_v31  ;;  %v4432_v31 = vld [vmem:[%s5791_s5 + $0x18] sm:$0xff]  }
 0x3db   :  { %1884 = vmatpush1.bf16.msra.mxu1 %v4389_v32  ;;  %v4433_v32 = vld [vmem:[%s5791_s5 + $0x60] sm:$0xff]  }
 0x3dc   :  { %1885 = vmatprep.subr.bf16.mxu1 %v4394_v33  ;;  %v4434_v33 = vld [vmem:[%s5791_s5 + $0x20] sm:$0xff]  }
 0x3df   :  { %1886 = vmatpush1.bf16.msra.mxu1 %v4392_v34  ;;  %v4435_v34 = vld [vmem:[%s5791_s5 + $0x68] sm:$0xff]  }
 0x3e0   :  { %1887 = vmatprep.subr.bf16.mxu1 %v4397_v35  ;;  %v4441_v35 = vld [vmem:[%s5792_s3 + $0x40] sm:$0xff]  }
 0x3e3   :  { %1888 = vmatpush1.bf16.msra.mxu1 %v4395_v36  ;;  %v4436_v36 = vld [vmem:[%s5791_s5 + $0x28] sm:$0xff]  }
 0x3e4   :  { %1889 = vmatprep.subr.bf16.mxu1 %v4400_v37  ;;  %v4437_v37 = vld [vmem:[%s5791_s5 + $0x70] sm:$0xff]  }
 0x3e7   :  { %1890 = vmatpush1.bf16.msra.mxu1 %v4398_v38  ;;  %v4438_v38 = vld [vmem:[%s5791_s5 + $0x30] sm:$0xff]  }
 0x3e8   :  { %1891 = vmatprep.subr.bf16.mxu1 %v4403_v39  ;;  %v4439_v39 = vld [vmem:[%s5791_s5 + $0x78] sm:$0xff]  }
 0x3eb   :  { %1892 = vmatpush1.bf16.msra.mxu1 %v4401_v40  ;;  %v4440_v40 = vld [vmem:[%s5791_s5 + $0x38] sm:$0xff]  }
 0x3ec   :  { %1893 = vmatprep.subr.bf16.mxu1 %v4406_v41  ;;  %v3718_v41 = vld [vmem:[%s5789_s7 + $0x5] ss:$8 sm:$0x3] }
 0x3ef   :  { %1894 = vmatpush1.bf16.msra.mxu1 %v4404_v42  ;;  %v1459_v42 = vrot.slane %v3718_v41, %v4831_v26 }
 0x3f0   :  { %1895 = vmatprep.subr.bf16.mxu1 %v4409_v43  ;;  %v1463_v43 = vrot.slane %v3718_v41, %v4837_v28 }
 0x3f3   :  { %1896 = vmatpush1.bf16.msra.mxu1 %v4407_v44 }
 0x3f4   :  { %1897 = vmatprep.subr.bf16.mxu1 %v4412_v45 }
 0x3f7   :  { %1898 = vmatpush1.bf16.msra.mxu1 %v4410_v46 }
 0x3f8   :  { %1899 = vmatprep.subr.bf16.mxu1 %v4415_v47 }
 0x3fb   :  { %1900 = vmatpush1.bf16.msra.mxu1 %v4413_v48 }
 0x3fc   :  { %1901 = vmatprep.subr.bf16.mxu1 %v4418_v49 }
 0x3ff   :  { %1902 = vmatpush1.bf16.msra.mxu1 %v4416_v50 }
 0x400   :  { %1903 = vmatprep.subr.bf16.mxu1 %v4421_v51  ;;  %v4442_v51 = vld [vmem:[%s5792_s3] sm:$0xff]  }
 0x403   :  { %1904 = vmatpush1.bf16.msra.mxu1 %v4419_v52 }
 0x404   :  { %1905 = vmatprep.subr.bf16.mxu1 %v4424_v18 }
 0x407   :  { %1906 = vmatpush1.bf16.msra.mxu1 %v4422_v19 }
 0x408   :  { %3958 = vmatprep.subr.bf16.mxu1 %v4441_v35 }
 0x49d   :  { %v1411_v56 = vpop.f32.mrb[8].mxu1 }
 0x49e   :  { %v1412_v57 = vadd.f32 %v1411_v56, %v1210_v54  ;;  %v1413_v58 = vpop.f32.mrb[9].mxu1  ;;  %v4444_v54 = vld [vmem:[%s5792_s3 + $0x8] sm:$0xff]   ;;  %v4446_v56 = vld [vmem:[%s5792_s3 + $0x10] sm:$0xff]  }
 0x49f   :  { %v1414_v59 = vadd.f32 %v1413_v58, %v1214_v55  ;;  %v1415_v60 = vpop.f32.mrb[10].mxu1  ;;  %v4445_v55 = vld [vmem:[%s5792_s3 + $0x50] sm:$0xff]   ;;  %v4448_v58 = vld [vmem:[%s5792_s3 + $0x18] sm:$0xff]  }
 0x4a0   :  { %v1416_v62 = vpop.f32.mrb[11].mxu1  ;;  %v1418_v1 = vpack.c.bf16 %v1412_v57, %v1412_v57  ;;  %v4447_v57 = vld [vmem:[%s5792_s3 + $0x58] sm:$0xff]   ;;  %v4450_v60 = vld [vmem:[%s5792_s3 + $0x20] sm:$0xff]  }
 0x4a1   :  { %v1419_v63 = vpack.c.bf16 %v1414_v59, %v1414_v59  ;;  %v4449_v59 = vld [vmem:[%s5792_s3 + $0x60] sm:$0xff]   ;;  %v4451_v62 = vld [vmem:[%s5792_s3 + $0x68] sm:$0xff]  }
 0x4a3   :  { %1658 = vmatprep.mubr.bf16.mxu0 %v1419_v63  ;;  %v4452_v63 = vld [vmem:[%s5792_s3 + $0x28] sm:$0xff]  }
 0x4a4   :  { %1659 = vmatmul.mubr.bf16.vlgmr.msra.gmra.mrb[8].mxu0 %v1418_v1  ;;  %v3816_v1 = vld [vmem:[%s5789_s7 + $0x7] ss:$8 sm:$0x3] }
 0x4a5   :  { %2026 = vmatpush1.bf16.msra.mxu0 %v4353_v0  ;;  %2057 = vmatprep.mubr.bf16.mxu0 %v4518_v61  ;;  %v4453_v0 = vld [vmem:[%s5792_s3 + $0x70] sm:$0xff]  }
 0x4a6   :  { %2027 = vmatprep.subr.bf16.mxu0 %v4358_v2  ;;  %v1938_v2 = vrot.slane %v3816_v1, %v4831_v26 }
 0x4a9   :  { %2028 = vmatpush1.bf16.msra.mxu0 %v4356_v3  ;;  %v1942_v3 = vrot.slane %v3816_v1, %v4837_v28 }
 0x4aa   :  { %2029 = vmatprep.subr.bf16.mxu0 %v4361_v4 }
 0x4ad   :  { %2030 = vmatpush1.bf16.msra.mxu0 %v4359_v5 }
 0x4ae   :  { %2031 = vmatprep.subr.bf16.mxu0 %v4364_v6 }
 0x4b1   :  { %2032 = vmatpush1.bf16.msra.mxu0 %v4362_v7 }
 0x4b2   :  { %2033 = vmatprep.subr.bf16.mxu0 %v4367_v8 }
 0x4b5   :  { %2034 = vmatpush1.bf16.msra.mxu0 %v4365_v9 }
 0x4b6   :  { %2035 = vmatprep.subr.bf16.mxu0 %v4370_v10 }
 0x4b9   :  { %2036 = vmatpush1.bf16.msra.mxu0 %v4368_v11 }
 0x4ba   :  { %2037 = vmatprep.subr.bf16.mxu0 %v4373_v12 }
 0x4bd   :  { %2038 = vmatpush1.bf16.msra.mxu0 %v4371_v13 }
 0x4be   :  { %2039 = vmatprep.subr.bf16.mxu0 %v4376_v14 }
 0x4c1   :  { %2040 = vmatpush1.bf16.msra.mxu0 %v4374_v15 }
 0x4c2   :  { %3936 = vmatprep.subr.bf16.mxu0 %v4425_v20 }
 0x4c4   :  { %2058 = vmatmul.mubr.bf16.vlgmr.msra.gmra.mrb[12].mxu0 %v40_v17 }
 0x4c5   :  { %3937 = vmatpush3.bf16.msra.mxu0 %v4426_v21 }
 0x4c6   :  { %3938 = vmatprep.subr.bf16.mxu0 %v4427_v22 }
 0x4c9   :  { %3939 = vmatpush3.bf16.msra.mxu0 %v4428_v23 }
 0x4ca   :  { %3940 = vmatprep.subr.bf16.mxu0 %v4429_v27 }
 0x4cd   :  { %3941 = vmatpush3.bf16.msra.mxu0 %v4430_v29 }
 0x4ce   :  { %3942 = vmatprep.subr.bf16.mxu0 %v4431_v30 }
 0x4d1   :  { %3943 = vmatpush3.bf16.msra.mxu0 %v4432_v31 }
 0x4d2   :  { %3944 = vmatprep.subr.bf16.mxu0 %v4433_v32 }
 0x4d5   :  { %3945 = vmatpush3.bf16.msra.mxu0 %v4434_v33 }
 0x4d6   :  { %3946 = vmatprep.subr.bf16.mxu0 %v4435_v34 }
 0x4d9   :  { %3947 = vmatpush3.bf16.msra.mxu0 %v4436_v36 }
 0x4da   :  { %3948 = vmatprep.subr.bf16.mxu0 %v4437_v37 }
 0x4dd   :  { %3949 = vmatpush3.bf16.msra.mxu0 %v4438_v38 }
 0x4de   :  { %3950 = vmatprep.subr.bf16.mxu0 %v4439_v39 }
 0x4e1   :  { %3951 = vmatpush3.bf16.msra.mxu0 %v4440_v40 }
 0x577   :  { %v1660_v44 = vpop.f32.mrb[8].mxu0 }
 0x578   :  { %v1661_v45 = vadd.f32 %v1660_v44, %v1459_v42  ;;  %v1662_v46 = vpop.f32.mrb[9].mxu0 }
 0x579   :  { %v1663_v47 = vadd.f32 %v1662_v46, %v1463_v43  ;;  %v1664_v48 = vpop.f32.mrb[10].mxu0 }
 0x57a   :  { %v1665_v49 = vpop.f32.mrb[11].mxu0  ;;  %v1667_v52 = vpack.c.bf16 %v1661_v45, %v1661_v45 }
 0x57b   :  { %v1668_v50 = vpack.c.bf16 %v1663_v47, %v1663_v47  ;;  %v3833_v49 = vld [vmem:[%s5789_s7 + $0x20] ss:$8 sm:$0x3] }
 0x57d   :  { %1907 = vmatprep.mubr.bf16.mxu1 %v1668_v50  ;;  %v3834_v50 = vld [vmem:[%s5789_s7 + $0x21] ss:$8 sm:$0x3] }
 0x57e   :  { %1908 = vmatmul.mubr.bf16.vlgmr.msra.gmra.mrb[12].mxu1 %v1667_v52 }
 0x57f   :  { %3959 = vmatpush3.bf16.msra.mxu1 %v4442_v51  ;;  %v2113_v51 = vrot.slane %v3833_v49, %v4831_v26 }
 0x580   :  { %3960 = vmatprep.subr.bf16.mxu1 %v4443_v53  ;;  %v2117_v53 = vrot.slane %v3833_v49, %v4837_v28 }
 0x583   :  { %3961 = vmatpush3.bf16.msra.mxu1 %v4444_v54 }
 0x584   :  { %3962 = vmatprep.subr.bf16.mxu1 %v4445_v55 }
 0x587   :  { %3963 = vmatpush3.bf16.msra.mxu1 %v4446_v56  ;;  %v2126_v56 = vrot.slane %v3834_v50, %v4831_v26 }
 0x588   :  { %3964 = vmatprep.subr.bf16.mxu1 %v4447_v57 }
 0x58b   :  { %3965 = vmatpush3.bf16.msra.mxu1 %v4448_v58  ;;  %v2130_v58 = vrot.slane %v3834_v50, %v4837_v28 }
 0x58c   :  { %3966 = vmatprep.subr.bf16.mxu1 %v4449_v59 }
 0x58f   :  { %3967 = vmatpush3.bf16.msra.mxu1 %v4450_v60 }
 0x590   :  { %3968 = vmatprep.subr.bf16.mxu1 %v4451_v62 }
 0x593   :  { %3969 = vmatpush3.bf16.msra.mxu1 %v4452_v63 }
 0x594   :  { %3970 = vmatprep.subr.bf16.mxu1 %v4453_v0 }
 0x597   :  { %v2059_v4 = vpop.f32.mrb[12].mxu0 }
 0x598   :  { %v2060_v5 = vadd.f32 %v2059_v4, %v1938_v2  ;;  %v2061_v6 = vpop.f32.mrb[13].mxu0 }
 0x599   :  { %v2062_v7 = vadd.f32 %v2061_v6, %v1942_v3  ;;  %v2063_v8 = vpop.f32.mrb[14].mxu0  ;;  %v4454_v3 = vld [vmem:[%s5792_s3 + $0x30] sm:$0xff]   ;;  %v4456_v6 = vld [vmem:[%s5792_s3 + $0x38] sm:$0xff]  }
 0x59a   :  { %v2070_v9 = vrot.slane %v2060_v5, 4  ;;  %v2064_v10 = vpop.f32.mrb[15].mxu0  ;;  %3971 = vmatpush3.bf16.msra.mxu1 %v4454_v3  ;;  %v4459_v8 = vld [vmem:[%s5793_s6 + $0x4] ss:$16 sps:$4 sm:$0xff]  }
 0x59b   :  { %v2076_v11 = vrot.slane %v2062_v7, 4  ;;  %2695 = vmatprep.subr.bf16.mxu0 %v4459_v8  ;;  %v4465_v10 = vld [vmem:[%s5793_s6 + $0x24] ss:$16 sps:$4 sm:$0xff]  }
 0x59c   :  { %v2071_v12 = vadd.f32 %v2070_v9, %v2060_v5  ;;  %v4462_v9 = vld [vmem:[%s5793_s6 + $0xc] ss:$16 sps:$4 sm:$0xff]  }
 0x59d   :  { %v2077_v13 = vadd.f32 %v2076_v11, %v2062_v7  ;;  %v4463_v11 = vld [vmem:[%s5793_s6 + $0x20] ss:$16 sps:$4 sm:$0xff]  }
 0x59e   :  { %v2072_v14 = vrot.slane %v2071_v12, 2 }
 0x59f   :  { %v2078_v15 = vrot.slane %v2077_v13, 2 }
 0x5a0   :  { %v2073_v17 = vadd.f32 %v2072_v14, %v2071_v12  ;;  %v4471_v12 = vld [vmem:[%s5793_s6 + $0x44] ss:$16 sps:$4 sm:$0xff]  }
 0x5a1   :  { %v2079_v18 = vadd.f32 %v2078_v15, %v2077_v13  ;;  %v4469_v13 = vld [vmem:[%s5793_s6 + $0x40] ss:$16 sps:$4 sm:$0xff]   ;;  %v4477_v14 = vld [vmem:[%s5793_s6 + $0x64] ss:$16 sps:$4 sm:$0xff]  }
 0x5a2   :  { %v2074_v19 = vrot.slane %v2073_v17, 1  ;;  %v4475_v15 = vld [vmem:[%s5793_s6 + $0x60] ss:$16 sps:$4 sm:$0xff]  }
 0x5a3   :  { %v2080_v20 = vrot.slane %v2079_v18, 1 }
 0x5a4   :  { %v2075_v21 = vadd.f32 %v2074_v19, %v2073_v17  ;;  %v4483_v17 = vld [vmem:[%s5793_s6 + $0x84] ss:$16 sps:$4 sm:$0xff]  }
 0x5a5   :  { %v2081_v22 = vadd.f32 %v2080_v20, %v2079_v18  ;;  %v4481_v18 = vld [vmem:[%s5793_s6 + $0x80] ss:$16 sps:$4 sm:$0xff]   ;;  %v4489_v19 = vld [vmem:[%s5793_s6 + $0xa4] ss:$16 sps:$4 sm:$0xff]  }
 0x5a6   :  { %v2083_v23 = vmul.f32 0.125, %v2075_v21  ;;  %v4487_v20 = vld [vmem:[%s5793_s6 + $0xa0] ss:$16 sps:$4 sm:$0xff]   ;;  %v3783_v21 = vld [vmem:[%s5789_s7 + $0x6] ss:$8 sm:$0x3] }
 0x5a7   :  { %v2084_v27 = vmul.f32 0.125, %v2081_v22  ;;  %v1708_v22 = vrot.slane %v3783_v21, %v4831_v26 }
 0x5a8   :  { %v2085_v29 = vsub.f32 %v2060_v5, %v2083_v23  ;;  %v4455_v5 = vld [vmem:[%s5792_s3 + $0x78] sm:$0xff]   ;;  %v1712_v23 = vrot.slane %v3783_v21, %v4837_v28 }
 0x5a9   :  { %v2086_v30 = vsub.f32 %v2062_v7, %v2084_v27  ;;  %3972 = vmatprep.subr.bf16.mxu1 %v4455_v5  ;;  %v4457_v7 = vld [vmem:[%s5793_s6] ss:$16 sps:$4 sm:$0xff]  }
 0x5aa   :  { %v2087_v31 = vmul.f32 %v2085_v29, %v2085_v29  ;;  %3973 = vmatpush3.bf16.msra.mxu1 %v4456_v6 }
 0x5ab   :  { %v2088_v32 = vmul.f32 %v2086_v30, %v2086_v30  ;;  %2736 = vmatprep.subr.bf16.mxu1 %v4462_v9 }
 0x5ac   :  { %v2089_v33 = vrot.slane %v2087_v31, 4 }
 0x5ad   :  { %v2095_v34 = vrot.slane %v2088_v32, 4 }
 0x5ae   :  { %v2090_v35 = vadd.f32 %v2089_v33, %v2087_v31 }
 0x5af   :  { %v2096_v36 = vadd.f32 %v2095_v34, %v2088_v32 }
 0x5b0   :  { %v2091_v37 = vrot.slane %v2090_v35, 2 }
 0x5b1   :  { %v2097_v38 = vrot.slane %v2096_v36, 2 }
 0x5b2   :  { %v2092_v39 = vadd.f32 %v2091_v37, %v2090_v35  ;;  %v4460_v35 = vld [vmem:[%s5793_s6 + $0x8] ss:$16 sps:$4 sm:$0xff]   ;;  %v4468_v37 = vld [vmem:[%s5793_s6 + $0x2c] ss:$16 sps:$4 sm:$0xff]  }
 0x5b3   :  { %v2098_v40 = vadd.f32 %v2097_v38, %v2096_v36  ;;  %v4466_v38 = vld [vmem:[%s5793_s6 + $0x28] ss:$16 sps:$4 sm:$0xff]  }
 0x5b4   :  { %v2093_v41 = vrot.slane %v2092_v39, 1 }
 0x5b5   :  { %v2099_v42 = vrot.slane %v2098_v40, 1 }
 0x5b6   :  { %v2094_v43 = vadd.f32 %v2093_v41, %v2092_v39  ;;  %v4474_v39 = vld [vmem:[%s5793_s6 + $0x4c] ss:$16 sps:$4 sm:$0xff]  }
 0x5b7   :  { %v2100_v44 = vadd.f32 %v2099_v42, %v2098_v40  ;;  %v4472_v40 = vld [vmem:[%s5793_s6 + $0x48] ss:$16 sps:$4 sm:$0xff]   ;;  %v4480_v41 = vld [vmem:[%s5793_s6 + $0x6c] ss:$16 sps:$4 sm:$0xff]  }
 0x5b8   :  { %v2101_v45 = vmul.f32 0.125, %v2094_v43  ;;  %v4486_v42 = vld [vmem:[%s5793_s6 + $0x8c] ss:$16 sps:$4 sm:$0xff]   ;;  %v4484_v43 = vld [vmem:[%s5793_s6 + $0x88] ss:$16 sps:$4 sm:$0xff]  }
 0x5b9   :  { %v2102_v46 = vmul.f32 0.125, %v2100_v44  ;;  %v4492_v44 = vld [vmem:[%s5793_s6 + $0xac] ss:$16 sps:$4 sm:$0xff]  }
 0x5ba   :  { %v2103_v47 = vadd.f32 1e-05, %v2101_v45  ;;  %v4490_v45 = vld [vmem:[%s5793_s6 + $0xa8] ss:$16 sps:$4 sm:$0xff]  }
 0x5bb   :  { %v2104_v48 = vadd.f32 1e-05, %v2102_v46 }
 0x5bc   :  { %4505 = vrsqrt.f32 %v2103_v47 }
 0x5bd   :  { %4507 = vrsqrt.f32 %v2104_v48 }
 0x5c6   :  { %v4506_v52 = vpop.eup %4505 }
 0x5c7   :  { %v4508_v54 = vpop.eup %4507  ;;  %v2107_v55 = vmul.f32 %v4506_v52, %v2085_v29  ;;  %v4498_v52 = vld [vmem:[%s5793_s6 + $0xcc] ss:$16 sps:$4 sm:$0xff]  }
 0x5c8   :  { %v2108_v57 = vmul.f32 %v4508_v54, %v2086_v30  ;;  %v4496_v54 = vld [vmem:[%s5793_s6 + $0xc8] ss:$16 sps:$4 sm:$0xff]  }
 0x5c9   :  { %v2120_v59 = vmul.f32 %v2113_v51, %v2107_v55  ;;  %v4495_v51 = vld [vmem:[%s5793_s6 + $0xc4] ss:$16 sps:$4 sm:$0xff]  }
 0x5ca   :  { %v2121_v60 = vmul.f32 %v2117_v53, %v2108_v57  ;;  %v4493_v53 = vld [vmem:[%s5793_s6 + $0xc0] ss:$16 sps:$4 sm:$0xff]   ;;  %v4501_v55 = vld [vmem:[%s5793_s6 + $0xe4] ss:$16 sps:$4 sm:$0xff]  }
 0x5cb   :  { %v2133_v62 = vadd.f32 %v2126_v56, %v2120_v59  ;;  %v4504_v56 = vld [vmem:[%s5793_s6 + $0xec] ss:$16 sps:$4 sm:$0xff]   ;;  %v4499_v57 = vld [vmem:[%s5793_s6 + $0xe0] ss:$16 sps:$4 sm:$0xff]  }
 0x5cc   :  { %v2134_v63 = vadd.f32 %v2130_v58, %v2121_v60  ;;  %v4502_v58 = vld [vmem:[%s5793_s6 + $0xe8] ss:$16 sps:$4 sm:$0xff]  }
 0x5cd   :  { %v2135_v0 = vmax.f32 %v2133_v62, 0.0 }
 0x5ce   :  { %v2136_v1 = vmax.f32 %v2134_v63, 0.0 }
 0x5cf   :  { %v2171_v2 = vpack.c.bf16 %v2135_v0, %v2135_v0  ;;  %v2477_v0 = vld [vmem:[%s5789_s7 + $0x22] ss:$0 sm:$0xff] }
 0x5d0   :  { %v2172_v4 = vpack.c.bf16 %v2136_v1, %v2136_v1 }
 0x5d2   :  { %2333 = vmatprep.mubr.bf16.mxu0 %v2172_v4 }
 0x5d3   :  { %2334 = vmatmul.mubr.bf16.vlgmr.msra.gmra.mrb[16].mxu0 %v2171_v2 }
 0x5d4   :  { %2727 = vmatprep.mubr.bf16.mxu0 %v4518_v61  ;;  %2696 = vmatpush1.bf16.msra.mxu0 %v4457_v7 }
 0x5d5   :  { %2697 = vmatprep.subr.bf16.mxu0 %v4465_v10 }
 0x5d8   :  { %2698 = vmatpush1.bf16.msra.mxu0 %v4463_v11 }
 0x5d9   :  { %2699 = vmatprep.subr.bf16.mxu0 %v4471_v12 }
 0x5dc   :  { %2700 = vmatpush1.bf16.msra.mxu0 %v4469_v13 }
 0x5dd   :  { %2701 = vmatprep.subr.bf16.mxu0 %v4477_v14 }
 0x5e0   :  { %2702 = vmatpush1.bf16.msra.mxu0 %v4475_v15 }
 0x5e1   :  { %2703 = vmatprep.subr.bf16.mxu0 %v4483_v17 }
 0x5e4   :  { %2704 = vmatpush1.bf16.msra.mxu0 %v4481_v18 }
 0x5e5   :  { %2705 = vmatprep.subr.bf16.mxu0 %v4489_v19 }
 0x5e8   :  { %2706 = vmatpush1.bf16.msra.mxu0 %v4487_v20 }
 0x5e9   :  { %2707 = vmatprep.subr.bf16.mxu0 %v4495_v51 }
 0x5ec   :  { %2708 = vmatpush1.bf16.msra.mxu0 %v4493_v53 }
 0x5ed   :  { %2709 = vmatprep.subr.bf16.mxu0 %v4501_v55 }
 0x5f0   :  { %2710 = vmatpush1.bf16.msra.mxu0 %v4499_v57 }
 0x651   :  { %v1909_v27 = vpop.f32.mrb[12].mxu1 }
 0x652   :  { %v1910_v29 = vadd.f32 %v1909_v27, %v1708_v22  ;;  %v1911_v30 = vpop.f32.mrb[13].mxu1  ;;  %v2869_v27 = vld [vmem:[%s5789_s7 + $0x23] ss:$0 sm:$0xff] }
 0x653   :  { %v1912_v31 = vadd.f32 %v1911_v30, %v1712_v23  ;;  %v1913_v32 = vpop.f32.mrb[14].mxu1  ;;  %v2870_v30 = vld [vmem:[%s5789_s7 + $0x24] ss:$0 sm:$0xff] }
 0x654   :  { %v1914_v33 = vpop.f32.mrb[15].mxu1  ;;  %v2137_v36 = vpack.c.bf16 %v1910_v29, %v1910_v29 }
 0x655   :  { %v2138_v34 = vpack.c.bf16 %v1912_v31, %v1912_v31 }
 0x657   :  { %2469 = vmatprep.mubr.bf16.mxu1 %v2138_v34 }
 0x658   :  { %2470 = vmatmul.mubr.bf16.vlgmr.msra.gmra.mrb[16].mxu1 %v2137_v36 }
 0x659   :  { %2737 = vmatpush1.bf16.msra.mxu1 %v4460_v35  ;;  %2768 = vmatprep.mubr.bf16.mxu1 %v4518_v61  ;;  %v4478_v61 = vld [vmem:[%s5793_s6 + $0x68] ss:$16 sps:$4 sm:$0xff]  }
 0x65a   :  { %2738 = vmatprep.subr.bf16.mxu1 %v4468_v37 }
 0x65d   :  { %2739 = vmatpush1.bf16.msra.mxu1 %v4466_v38 }
 0x65e   :  { %2740 = vmatprep.subr.bf16.mxu1 %v4474_v39 }
 0x661   :  { %2741 = vmatpush1.bf16.msra.mxu1 %v4472_v40  ;;  %v2525_v40 = vsub.s32 2, %v4828_v25 }
 0x662   :  { %2742 = vmatprep.subr.bf16.mxu1 %v4480_v41 }
 0x665   :  { %2743 = vmatpush1.bf16.msra.mxu1 %v4478_v61  ;;  %v3867_v61 = vld [vmem:[%s5789_s7 + $0x25] ss:$8 sm:$0xf] }
 0x666   :  { %2744 = vmatprep.subr.bf16.mxu1 %v4486_v42  ;;  %v2529_v42 = vsub.s32 3, %v4828_v25 }
 0x669   :  { %2745 = vmatpush1.bf16.msra.mxu1 %v4484_v43  ;;  %v2518_v43 = vrot.slane %v3867_v61, %v4831_v26  ;;  %v4515_v26 = vld [vmem:[%s5787_s0] sm:$0xff] }
 0x66a   :  { %2746 = vmatprep.subr.bf16.mxu1 %v4492_v44  ;;  %v2526_v44 = vrot.slane %v3867_v61, %v2525_v40 }
 0x66d   :  { %2747 = vmatpush1.bf16.msra.mxu1 %v4490_v45  ;;  %v2522_v45 = vrot.slane %v3867_v61, %v4837_v28 }
 0x66e   :  { %2748 = vmatprep.subr.bf16.mxu1 %v4498_v52 }
 0x671   :  { %2749 = vmatpush1.bf16.msra.mxu1 %v4496_v54 }
 0x672   :  { %2750 = vmatprep.subr.bf16.mxu1 %v4504_v56 }
 0x675   :  { %2751 = vmatpush1.bf16.msra.mxu1 %v4502_v58 }
 0x6a6   :  { %v3952_v46 = vpop.f32.mrb[16].mxu0 }
 0x6a7   :  { %v3953_v47 = vpop.f32.mrb[17].mxu0 }
 0x6a8   :  { %v3954_v48 = vadd.f32 %v3953_v47, %v3952_v46  ;;  %v3955_v49 = vpop.f32.mrb[18].mxu0  ;;  %v2530_v46 = vrot.slane %v3867_v61, %v2529_v42 }
 0x6a9   :  { %v3956_v50 = vpop.f32.mrb[19].mxu0 }
 0x72b   :  { %v3974_v59 = vpop.f32.mrb[16].mxu1 }
 0x72c   :  { %v3975_v60 = vpop.f32.mrb[17].mxu1 }
 0x72d   :  { %v3976_v62 = vadd.f32 %v3975_v60, %v3974_v59  ;;  %v3977_v63 = vpop.f32.mrb[18].mxu1  ;;  %v4516_v60 = vld [vmem:[%s5787_s0 + $0x8] sm:$0xff] }
 0x72e   :  { %v3978_v1 = vpop.f32.mrb[19].mxu1 }
 0x72f   :  { %v2472_v2 = vadd.f32 %v3976_v62, %v3954_v48 }
 0x731   :  { %v2478_v3 = vadd.f32 %v2477_v0, %v2472_v2  ;;  %v4517_v0 = vld [vmem:[%s5787_s0 + $0x10] sm:$0xff] }
 0x733   :  { %v2871_v4 = vrot.slane %v2478_v3, 4  ;;  %3381 = vst [vmem:[%s5794_s8] sm:$0xff] %v2478_v3  ;;  %v2479_v5 = vpack.c.bf16 %v2478_v3, %v2478_v3 }
 0x735   :  { %v2872_v6 = vadd.f32 %v2871_v4, %v2478_v3  ;;  %2728 = vmatmul.mubr.bf16.vlgmr.msra.gmra.mrb[20].mxu0 %v2479_v5  ;;  %2769 = vmatmul.mubr.bf16.vlgmr.msra.gmra.mrb[20].mxu1 %v2479_v5 }
 0x737   :  { %v2873_v7 = vrot.slane %v2872_v6, 2 }
 0x739   :  { %v2874_v8 = vadd.f32 %v2873_v7, %v2872_v6 }
 0x73b   :  { %v2875_v9 = vrot.slane %v2874_v8, 1 }
 0x73d   :  { %v2876_v10 = vadd.f32 %v2875_v9, %v2874_v8 }
 0x73f   :  { %v2877_v11 = vmul.f32 0.125, %v2876_v10 }
 0x741   :  { %v2878_v12 = vsub.f32 %v2478_v3, %v2877_v11  ;;  %v5662_v11 = vand.u32 127, %v91_v24 }
 0x743   :  { %v2879_v13 = vmul.f32 %v2878_v12, %v2878_v12  ;;  %vm3167_vm2 = vcmp.ge.s32.totalorder %v5662_v11, 64 }
 0x745   :  { %v2880_v14 = vrot.slane %v2879_v13, 4 }
 0x747   :  { %v2881_v15 = vadd.f32 %v2880_v14, %v2879_v13 }
 0x749   :  { %v2882_v17 = vrot.slane %v2881_v15, 2 }
 0x74b   :  { %v2883_v18 = vadd.f32 %v2882_v17, %v2881_v15 }
 0x74d   :  { %v2884_v19 = vrot.slane %v2883_v18, 1 }
 0x74f   :  { %v2885_v20 = vadd.f32 %v2884_v19, %v2883_v18 }
 0x751   :  { %v2886_v21 = vmul.f32 0.125, %v2885_v20 }
 0x753   :  { %v2887_v22 = vadd.f32 1e-05, %v2886_v21 }
 0x755   :  { %4509 = vrsqrt.f32 %v2887_v22 }
 0x75f   :  { %v4510_v23 = vpop.eup %4509 }
 0x760   :  { %v2889_v29 = vmul.f32 %v4510_v23, %v2878_v12  ;;  %v2781_v12 = vadd.s32 384, %v5662_v11 }
 0x762   :  { %v2890_v31 = vmul.f32 %v2889_v29, %v2869_v27  ;;  %vm2789_vm1 = vcmp.lt.s32.totalorder %v2781_v12, 415  ;;  %v3136_v27 = vadd.s32 8, %v4828_v25 }
 0x764   :  { %v2891_v32 = vadd.f32 %v2890_v31, %v2870_v30 }
 0x766   :  { %2892 = vxpose.xlu0.b32.start.end [1/1] (short) %v2891_v32, 128  ;;  %3997 = vmatprep.subr.mxu0 %v2891_v32 }
 0x767   :  { %4023 = vmatprep.subr.mxu1 %v2891_v32  ;;  %3998 = vmatpush3.msra.mxu0 %v2891_v32 }
 0x768   :  { %4024 = vmatpush3.msra.mxu1 %v2891_v32  ;;  %v3184_v32 = vadd.s32 64, %v3136_v27 }
 0x76a   :  { %vm3200_vm3 = vcmp.eq.s32.totalorder %v5662_v11, %v3184_v32 }
 0x76b   :  { %vm5683_vm5 = vmand %vm3167_vm2, %vm3200_vm3 }
 0x7e6   :  { %v2908_v33 = vpop.trf.xlu0 }
 0x7e7   :  { %3999 = vmatprep.mubr.msk.f32.mxu0 %vm2924_vm0, %v2908_v33  ;;  %v3143_v33 = vadd.s32 64, %v4828_v25 }
 0x7e9   :  { %vm3199_vm4 = vcmp.eq.s32.totalorder %v5662_v11, %v3143_v33 }
 0x7ea   :  { %v2909_v34 = vpop.trf.xlu0  ;;  %vm5689_vm6 = vmand %vm3167_vm2, %vm3199_vm4  ;;  %vm3386_vm4 = vcmp.eq.s32.totalorder %v5662_v11, 0 }
 0x7eb   :  { %4000 = vmatmul.mubr.msk.f32.vlgmr.msra.gmra.mrb[24].mxu0 %vm2924_vm0, %v2909_v34 }
 0x7ee   :  { %v2910_v35 = vpop.trf.xlu0 }
 0x7ef   :  { %4002 = vmatprep.mubr.msk.f32.mxu0 %vm2924_vm0, %v2910_v35 }
 0x7f2   :  { %v2911_v36 = vpop.trf.xlu0 }
 0x7f3   :  { %4003 = vmatmul.mubr.msk.f32.gmra.mrb[26].mxu0 %vm2924_vm0, %v2911_v36 }
 0x7f6   :  { %v2912_v37 = vpop.trf.xlu0 }
 0x7f7   :  { %4005 = vmatprep.mubr.msk.f32.mxu0 %vm2924_vm0, %v2912_v37  ;;  %v3138_v37 = vadd.s32 24, %v4828_v25 }
 0x7fa   :  { %v2913_v38 = vpop.trf.xlu0 }
 0x7fb   :  { %4006 = vmatmul.mubr.msk.f32.gmra.mrb[28].mxu0 %vm2924_vm0, %v2913_v38 }
 0x7fe   :  { %v2914_v39 = vpop.trf.xlu0 }
 0x7ff   :  { %4008 = vmatprep.mubr.msk.f32.mxu0 %vm2924_vm0, %v2914_v39  ;;  %v3137_v39 = vadd.s32 16, %v4828_v25 }
 0x802   :  { %v2915_v41 = vpop.trf.xlu0 }
 0x803   :  { %4009 = vmatmul.mubr.msk.f32.gmra.mrb[30].mxu0 %vm2924_vm0, %v2915_v41 }
 0x806   :  { %v2916_v47 = vpop.trf.xlu0 }
 0x807   :  { %4011 = vmatprep.mubr.msk.f32.mxu1 %vm2924_vm0, %v2916_v47 }
 0x808   :  { %v2729_v48 = vpop.f32.mrb[20].mxu0  ;;  %v2770_v49 = vpop.f32.mrb[20].mxu1 }
 0x809   :  { %v2730_v50 = vadd.f32 %v2729_v48, %v2518_v43  ;;  %v2771_v51 = vadd.f32 %v2770_v49, %v2526_v44  ;;  %v2731_v52 = vpop.f32.mrb[21].mxu0  ;;  %v2772_v53 = vpop.f32.mrb[21].mxu1  ;;  %v3186_v49 = vadd.s32 64, %v3138_v37 }
 0x80a   :  { %v2732_v54 = vadd.f32 %v2731_v52, %v2522_v45  ;;  %v2773_v55 = vadd.f32 %v2772_v53, %v2530_v46  ;;  %v2733_v56 = vpop.f32.mrb[22].mxu0  ;;  %v2774_v57 = vpop.f32.mrb[22].mxu1  ;;  %v3185_v52 = vadd.s32 64, %v3137_v39 }
 0x80b   :  { %v2822_v58 = vsub.f32 %v4515_v26, %v2730_v50  ;;  %3382 = vst [vmem:[%s5795_s9] sm:$0xff] %v2730_v50  ;;  %3384 = vst [vmem:[%s5795_s9 + $0x10] sm:$0xff] %v2771_v51  ;;  %v2734_v28 = vpop.f32.mrb[23].mxu0  ;;  %v2775_v59 = vpop.f32.mrb[23].mxu1  ;;  %v2824_v1 = vsub.f32 %v4517_v0, %v2771_v51  ;;  %vm3202_vm7 = vcmp.eq.s32.totalorder %v5662_v11, %v3186_v49 }
 0x80c   :  { %v2823_v62 = vsub.f32 %v4516_v60, %v2732_v54  ;;  %3383 = vst [vmem:[%s5795_s9 + $0x8] sm:$0xff] %v2732_v54  ;;  %v3903_v63 = vmul.f32 -1.442695, %v2773_v55  ;;  %v2917_v2 = vpop.trf.xlu0  ;;  %v3140_v60 = vadd.s32 40, %v4828_v25  ;;  %vm3201_vm8 = vcmp.eq.s32.totalorder %v5662_v11, %v3185_v52  ;;  %vm5711_vm9 = vmand %vm3167_vm2, %vm3202_vm7 }
 0x80d   :  { %v2826_v3 = vmul.f32 %v2822_v58, %v2822_v58  ;;  %4012 = vmatmul.mubr.msk.f32.vlgmr.msra.gmra.mrb[24].mxu1 %vm2924_vm0, %v2917_v2  ;;  %v2828_v5 = vmul.f32 %v2824_v1, %v2824_v1  ;;  %v3139_v1 = vadd.s32 32, %v4828_v25  ;;  %vm5717_vm10 = vmand %vm3167_vm2, %vm3201_vm8 }
 0x80e   :  { %v2827_v4 = vmul.f32 %v2823_v62, %v2823_v62  ;;  %4511 = vpow2.f32 %v3903_v63 }
 0x810   :  { %v2853_v6 = vadd.f32 %v2827_v4, %v2826_v3  ;;  %v2918_v7 = vpop.trf.xlu0 }
 0x811   :  { %4014 = vmatprep.mubr.msk.f32.mxu1 %vm2924_vm0, %v2918_v7 }
 0x812   :  { %v2854_v8 = vadd.f32 %v2853_v6, %v2828_v5 }
 0x814   :  { %2856 = vadd.xlane.f32.xlu1 %v2854_v8  ;;  %v2919_v14 = vpop.trf.xlu0 }
 0x815   :  { %4015 = vmatmul.mubr.msk.f32.gmra.mrb[26].mxu1 %vm2924_vm0, %v2919_v14  ;;  %v3187_v14 = vadd.s32 64, %v3139_v1 }
 0x817   :  { %vm3203_vm12 = vcmp.eq.s32.totalorder %v5662_v11, %v3187_v14 }
 0x818   :  { %v4512_v9 = vpop.eup %4511  ;;  %v2920_v19 = vpop.trf.xlu0  ;;  %vm5745_vm14 = vmand %vm3167_vm2, %vm3203_vm12 }
 0x819   :  { %v2805_v10 = vadd.f32 1.0, %v4512_v9  ;;  %4017 = vmatprep.mubr.msk.f32.mxu1 %vm2924_vm0, %v2920_v19 }
 0x81b   :  { %4513 = vrcp.f32 %v2805_v10  ;;  %v3188_v10 = vadd.s32 64, %v3140_v60 }
 0x81c   :  { %v2921_v24 = vpop.trf.xlu0 }
 0x81d   :  { %4018 = vmatmul.mubr.msk.f32.gmra.mrb[28].mxu1 %vm2924_vm0, %v2921_v24  ;;  %vm3204_vm11 = vcmp.eq.s32.totalorder %v5662_v11, %v3188_v10 }
 0x81e   :  { %vm5739_vm13 = vmand %vm3167_vm2, %vm3204_vm11 }
 0x820   :  { %v2922_v20 = vpop.trf.xlu0 }
 0x821   :  { %4020 = vmatprep.mubr.msk.f32.mxu1 %vm2924_vm0, %v2922_v20  ;;  %v3142_v20 = vadd.s32 56, %v4828_v25 }
 0x823   :  { %v3190_v39 = vadd.s32 64, %v3142_v20 }
 0x824   :  { %v2923_v21 = vpop.trf.xlu0 }
 0x825   :  { %v4514_v13 = vpop.eup %4513  ;;  %4021 = vmatmul.mubr.msk.f32.gmra.mrb[30].mxu1 %vm2924_vm0, %v2923_v21  ;;  %vm3206_vm15 = vcmp.eq.s32.totalorder %v5662_v11, %v3190_v39 }
 0x826   :  { %v2817_v15 = vsel %vm2789_vm1, %v4514_v13, 0.0  ;;  %vm5765_vm1 = vmand %vm3167_vm2, %vm3206_vm15 }
 0x827   :  { %v2825_v17 = vsub.f32 %v5384_v16, %v2817_v15  ;;  %3385 = vst [vmem:[%s5795_s9 + $0x18] sm:$0xff] %v2817_v15 }
 0x829   :  { %v2829_v18 = vmul.f32 %v2825_v17, %v2825_v17 }
 0x82b   :  { %2837 = vadd.xlane.f32.xlu0 %v2829_v18 }
 0x8a1   :  { %v2857_v22 = vpop.xlane.xlu1 %2856 }
 0x8a2   :  { %v2858_v16 = vrot.slane %v2857_v22, 4 }
 0x8a4   :  { %v2859_v23 = vadd.f32 %v2858_v16, %v2857_v22 }
 0x8a6   :  { %v2860_v29 = vrot.slane %v2859_v23, 2 }
 0x8a8   :  { %v2861_v35 = vadd.f32 %v2860_v29, %v2859_v23  ;;  %v3141_v23 = vadd.s32 48, %v4828_v25 }
 0x8aa   :  { %v2862_v44 = vrot.slane %v2861_v35, 1 }
 0x8ac   :  { %v2863_v58 = vadd.f32 %v2862_v44, %v2861_v35 }
 0x8b8   :  { %v2838_v30 = vpop.xlane.xlu0 %2837 }
 0x8b9   :  { %v2839_v31 = vrot.slane %v2838_v30, 4 }
 0x8bb   :  { %v2840_v34 = vadd.f32 %v2839_v31, %v2838_v30 }
 0x8bd   :  { %v2841_v36 = vrot.slane %v2840_v34, 2 }
 0x8be   :  { %v4001_v38 = vpop.f32.mrb[24].mxu0 }
 0x8bf   :  { %v3119_v40 = vmul.f32 0.125, %v4001_v38  ;;  %v3039_v41 = vpop.f32.mrb[25].mxu0  ;;  %v2842_v61 = vadd.f32 %v2841_v36, %v2840_v34 }
 0x8c0   :  { %v3118_v43 = vmul.f32 0.125, %v3039_v41 }
 0x8c1   :  { %v3921_v45 = vadd.f32 -1.0, %v3119_v40  ;;  %v3305_v46 = vmul.f32 %v3119_v40, %v3119_v40  ;;  %v2843_v48 = vrot.slane %v2842_v61, 1 }
 0x8c2   :  { %v3920_v50 = vadd.f32 -1.0, %v3118_v43  ;;  %v3304_v51 = vmul.f32 %v3118_v43, %v3118_v43 }
 0x8c3   :  { %v3248_v53 = vmul.f32 %v3921_v45, %v3921_v45  ;;  %v3321_v54 = vsel %vm5683_vm5, 0.0, %v3305_v46  ;;  %v2844_v55 = vadd.f32 %v2843_v48, %v2842_v61  ;;  %v3189_v61 = vadd.s32 64, %v3141_v23 }
 0x8c4   :  { %v3337_v56 = vsel %vm3167_vm2, %v3321_v54, 0.0  ;;  %v3247_v57 = vmul.f32 %v3920_v50, %v3920_v50  ;;  %v3320_v26 = vsel %vm5689_vm6, 0.0, %v3304_v51 }
 0x8c5   :  { %v3264_v28 = vsel %vm5683_vm5, %v3248_v53, 0.0  ;;  %v3336_v59 = vsel %vm3167_vm2, %v3320_v26, 0.0  ;;  %4031 = vpush %v2844_v55  ;;  %vm3205_vm0 = vcmp.eq.s32.totalorder %v5662_v11, %v3189_v61  ;;  %vm3391_vm5 = vcmp.eq.s32.totalorder %v5662_v11, 2 }
 0x8c6   :  { %v3263_v62 = vsel %vm5689_vm6, %v3247_v57, 0.0  ;;  %v3352_v63 = vadd.f32 %v3337_v56, %v3336_v59  ;;  %4033 = vpush %v2863_v58  ;;  %v4004_v0 = vpop.f32.mrb[26].mxu0  ;;  %vm3221_vm3 = vmand %vm3167_vm2, %vm3205_vm0  ;;  %vm3394_vm6 = vcmp.eq.s32.totalorder %v5662_v11, 3 }
 0x8c7   :  { %v3279_v2 = vadd.f32 %v3264_v28, %v3263_v62  ;;  %v3121_v3 = vmul.f32 0.125, %v4004_v0  ;;  %v3049_v4 = vpop.f32.mrb[27].mxu0 }
 0x8c8   :  { %v3120_v6 = vmul.f32 0.125, %v3049_v4 }
 0x8c9   :  { %v3923_v7 = vadd.f32 -1.0, %v3121_v3  ;;  %v3307_v8 = vmul.f32 %v3121_v3, %v3121_v3 }
 0x8ca   :  { %v3922_v12 = vadd.f32 -1.0, %v3120_v6  ;;  %v3306_v13 = vmul.f32 %v3120_v6, %v3120_v6 }
 0x8cb   :  { %v3250_v15 = vmul.f32 %v3923_v7, %v3923_v7  ;;  %v3323_v17 = vsel %vm5711_vm9, 0.0, %v3307_v8 }
 0x8cc   :  { %v3249_v18 = vmul.f32 %v3922_v12, %v3922_v12  ;;  %v3322_v19 = vsel %vm5717_vm10, 0.0, %v3306_v13  ;;  %v3339_v27 = vsel %vm3167_vm2, %v3323_v17, 0.0 }
 0x8cd   :  { %v3338_v24 = vsel %vm3167_vm2, %v3322_v19, 0.0  ;;  %v3266_v32 = vsel %vm5711_vm9, %v3250_v15, 0.0 }
 0x8ce   :  { %v3265_v21 = vsel %vm5717_vm10, %v3249_v18, 0.0  ;;  %v3353_v22 = vadd.f32 %v3352_v63, %v3338_v24  ;;  %v4007_v16 = vpop.f32.mrb[28].mxu0 }
 0x8cf   :  { %v3280_v29 = vadd.f32 %v3279_v2, %v3265_v21  ;;  %v3123_v30 = vmul.f32 0.125, %v4007_v16  ;;  %v3059_v31 = vpop.f32.mrb[29].mxu0 }
 0x8d0   :  { %v3122_v34 = vmul.f32 0.125, %v3059_v31  ;;  %v3354_v35 = vadd.f32 %v3353_v22, %v3339_v27 }
 0x8d1   :  { %v3925_v36 = vadd.f32 -1.0, %v3123_v30  ;;  %v3309_v37 = vmul.f32 %v3123_v30, %v3123_v30  ;;  %v3281_v38 = vadd.f32 %v3280_v29, %v3266_v32 }
 0x8d2   :  { %v3924_v40 = vadd.f32 -1.0, %v3122_v34  ;;  %v3308_v41 = vmul.f32 %v3122_v34, %v3122_v34 }
 0x8d3   :  { %v3252_v42 = vmul.f32 %v3925_v36, %v3925_v36  ;;  %v3325_v43 = vsel %vm5739_vm13, 0.0, %v3309_v37 }
 0x8d4   :  { %v3251_v44 = vmul.f32 %v3924_v40, %v3924_v40  ;;  %v3324_v45 = vsel %vm5745_vm14, 0.0, %v3308_v41  ;;  %v3341_v50 = vsel %vm3167_vm2, %v3325_v43, 0.0 }
 0x8d5   :  { %v3340_v46 = vsel %vm3167_vm2, %v3324_v45, 0.0  ;;  %v3268_v54 = vsel %vm5739_vm13, %v3252_v42, 0.0 }
 0x8d6   :  { %v3267_v47 = vsel %vm5745_vm14, %v3251_v44, 0.0  ;;  %v3355_v48 = vadd.f32 %v3354_v35, %v3340_v46  ;;  %v4010_v49 = vpop.f32.mrb[30].mxu0 }
 0x8d7   :  { %v3282_v51 = vadd.f32 %v3281_v38, %v3267_v47  ;;  %v3125_v52 = vmul.f32 0.125, %v4010_v49  ;;  %v3069_v53 = vpop.f32.mrb[31].mxu0 }
 0x8d8   :  { %v3124_v55 = vmul.f32 0.125, %v3069_v53  ;;  %v3356_v57 = vadd.f32 %v3355_v48, %v3341_v50 }
 0x8d9   :  { %v3927_v26 = vadd.f32 -1.0, %v3125_v52  ;;  %v3311_v58 = vmul.f32 %v3125_v52, %v3125_v52  ;;  %v3283_v28 = vadd.f32 %v3282_v51, %v3268_v54 }
 0x8da   :  { %v3926_v59 = vadd.f32 -1.0, %v3124_v55  ;;  %v3310_v60 = vmul.f32 %v3124_v55, %v3124_v55 }
 0x8db   :  { %v3254_v62 = vmul.f32 %v3927_v26, %v3927_v26  ;;  %v3327_v1 = vsel %vm5765_vm1, 0.0, %v3311_v58 }
 0x8dc   :  { %v3253_v63 = vmul.f32 %v3926_v59, %v3926_v59  ;;  %v3326_v0 = vsel %vm3221_vm3, 0.0, %v3310_v60  ;;  %v3343_v6 = vsel %vm3167_vm2, %v3327_v1, 0.0 }
 0x8dd   :  { %v3342_v2 = vsel %vm3167_vm2, %v3326_v0, 0.0  ;;  %v3270_v7 = vsel %vm5765_vm1, %v3254_v62, 0.0  ;;  %vm3388_vm2 = vcmp.eq.s32.totalorder %v5662_v11, 1 }
 0x8de   :  { %v3269_v3 = vsel %vm3221_vm3, %v3253_v63, 0.0  ;;  %v3357_v4 = vadd.f32 %v3356_v57, %v3342_v2 }
 0x8df   :  { %v3284_v5 = vadd.f32 %v3283_v28, %v3269_v3 }
 0x8e0   :  { %v3358_v8 = vadd.f32 %v3357_v4, %v3343_v6  ;;  %v4013_v9 = vpop.f32.mrb[24].mxu1 }
 0x8e1   :  { %v3285_v10 = vadd.f32 %v3284_v5, %v3270_v7  ;;  %v3079_v12 = vpop.f32.mrb[25].mxu1 }
 0x8e3   :  { %3294 = vadd.xlane.f32.xlu1 %v3285_v10 }
 0x8e7   :  { %3367 = vadd.xlane.f32.xlu1 %v3358_v8 }
 0x8e8   :  { %v4016_v13 = vpop.f32.mrb[26].mxu1 }
 0x8e9   :  { %v3089_v14 = vpop.f32.mrb[27].mxu1 }
 0x8f0   :  { %v4019_v15 = vpop.f32.mrb[28].mxu1 }
 0x8f1   :  { %v3099_v17 = vpop.f32.mrb[29].mxu1 }
 0x8f6   :  { %s4032_s9 = spop %4031 }
 0x8f7   :  { %s4034_s14 = spop %4033  ;;  %v2846_v25 = vstv %s4032_s9 }
 0x8f8   :  { %v4022_v18 = vpop.f32.mrb[30].mxu1  ;;  %v2865_v36 = vstv %s4034_s14  ;;  %v2848_v39 = vmul.f32 0.004032258, %v2846_v25 }
 0x8f9   :  { %v3109_v19 = vpop.f32.mrb[31].mxu1  ;;  %v2866_v37 = vmul.f32 0.001, %v2865_v36 }
 0x8fa   :  { %v3387_v43 = vsel %vm3386_vm4, %v2848_v39, 0.0 }
 0x8fb   :  { %v2868_v38 = vmul.f32 0.0004032258, %v2866_v37 }
 0x8fd   :  { %v3389_v41 = vsel %vm3388_vm2, %v2868_v38, 0.0  ;;  %v3379_v44 = vadd.f32 %v2868_v38, %v2848_v39 }
 0x8fe   :  { %v3390_v46 = vadd.f32 %v3389_v41, %v3387_v43 }
 0x970   :  { %v3295_v24 = vpop.xlane.xlu1 %3294 }
 0x971   :  { %v3296_v20 = vrot.slane %v3295_v24, 4 }
 0x973   :  { %v3297_v21 = vadd.f32 %v3296_v20, %v3295_v24 }
 0x974   :  { %v3368_v22 = vpop.xlane.xlu1 %3367 }
 0x975   :  { %v3298_v16 = vrot.slane %v3297_v21, 2  ;;  %v3369_v23 = vrot.slane %v3368_v22, 4 }
 0x977   :  { %v3370_v27 = vadd.f32 %v3369_v23, %v3368_v22  ;;  %v3299_v29 = vadd.f32 %v3298_v16, %v3297_v21 }
 0x979   :  { %v3371_v30 = vrot.slane %v3370_v27, 2  ;;  %v3300_v31 = vrot.slane %v3299_v29, 1 }
 0x97b   :  { %v3372_v32 = vadd.f32 %v3371_v30, %v3370_v27  ;;  %v3301_v33 = vadd.f32 %v3300_v31, %v3299_v29 }
 0x97d   :  { %4035 = vpush %v3301_v33  ;;  %v3373_v34 = vrot.slane %v3372_v32, 1 }
 0x97f   :  { %v3374_v35 = vadd.f32 %v3373_v34, %v3372_v32 }
 0x981   :  { %4037 = vpush %v3374_v35 }
 0x9ae   :  { %s4036_s15 = spop %4035 }
 0x9af   :  { %v3303_v42 = vstv %s4036_s15 }
 0x9b2   :  { %s4038_s16 = spop %4037 }
 0x9b3   :  { %v3376_v40 = vstv %s4038_s16 }
 0x9b4   :  { %v3377_v61 = vmul.f32 0.25, %v3376_v40 }
 0x9b6   :  { %v3378_v45 = vadd.f32 %v3377_v61, %v3303_v42 }
 0x9b8   :  { %v3380_v47 = vadd.f32 %v3379_v44, %v3378_v45  ;;  %v3392_v48 = vsel %vm3391_vm5, %v3378_v45, 0.0 }
 0x9b9   :  { %v3393_v49 = vadd.f32 %v3392_v48, %v3390_v46 }
 0x9ba   :  { %v3395_v50 = vsel %vm3394_vm6, %v3380_v47, 0.0 }
 0x9bb   :  { %v3396_v51 = vadd.f32 %v3395_v50, %v3393_v49 }
 0x9bd   :  { %3397 = vst [vmem:[%s5796_s10] sm:$0x1] %v3396_v51 }

</bundles_post_ra>
